<compile_context>
chip_gen: v7x
topology: tpu7x:2x2x1
jax: 0.10.0
libtpu: 0.0.40
codegen_flags: <defaults>
</compile_context>

<pallas_src>
import functools

import jax
import jax.numpy as jnp
from jax.experimental import pallas as pl
from jax.experimental.pallas import tpu as pltpu


def _round_up(v, m):
    return (v + m - 1) // m * m


def _deepset_kernel(xm_ref, inv_ref,
                    w1_ref, b1_ref, w2_ref, b2_ref,
                    w3_ref, b3_ref, w4_ref, b4_ref,
                    out_ref, *, n_pad, d_in):
    xm = xm_ref[...]                              # (b_tile*n_pad, d_in+1) f32
    x = xm[:, :d_in].astype(jnp.bfloat16)         # in-kernel bf16 cast for MXU
    mask = xm[:, d_in:d_in + 1]                   # (rows, 1) f32, exact 0/1

    # ---- phi: Linear -> ReLU -> Linear -> ReLU (bf16 GEMMs, f32 accum) ----
    h = jnp.dot(x, w1_ref[...], preferred_element_type=jnp.float32) + b1_ref[...]
    h = jnp.maximum(h, 0.0).astype(jnp.bfloat16)
    h = jnp.dot(h, w2_ref[...], preferred_element_type=jnp.float32) + b2_ref[...]

    # ---- fused ReLU + mask, then per-set sum as a sublane reduction ----
    h = jnp.maximum(h, 0.0) * mask                # (rows, H_p) f32, one VPU pass
    b_tile = out_ref.shape[0]
    x_sum = jnp.sum(h.reshape(b_tile, n_pad, h.shape[-1]), axis=1)  # (b_tile, H_p)

    # ---- exact mean: 1/clip(set_size, 1) precomputed in the wrapper ----
    x_mean = x_sum * inv_ref[...]                 # (b_tile, H_p)

    # ---- rho: Linear -> ReLU -> Linear (bf16 GEMMs, f32 accum) ----
    r = jnp.dot(x_mean.astype(jnp.bfloat16), w3_ref[...],
                preferred_element_type=jnp.float32) + b3_ref[...]
    r = jnp.maximum(r, 0.0).astype(jnp.bfloat16)
    out_ref[...] = jnp.dot(r, w4_ref[...],
                           preferred_element_type=jnp.float32) + b4_ref[...]


def _vmem_tile_bytes(shape, dtype):
    itemsize = jnp.dtype(dtype).itemsize
    sub = 8 * max(1, 4 // itemsize)               # 8 rows f32, 16 rows bf16
    r = _round_up(shape[-2], sub) if len(shape) >= 2 else sub
    c = _round_up(shape[-1], 128)
    lead = 1
    for d in shape[:-2]:
        lead *= d
    return lead * r * c * itemsize


def deepset_forward(x, mask, params, *, b_tile=None):
    """x: (B, N, D_in) f32, mask: (B, N) f32 -> (B, D_out) f32."""
    B, N, D_in = x.shape
    w1, b1, w2, b2, w3, b3, w4, b4 = params
    H = w1.shape[1]
    D_out = w4.shape[1]

    H_p = _round_up(H, 128)
    D_out_p = _round_up(D_out, 128)
    N_pad = _round_up(N, 8)                        # zero-mask rows are inert

    # ---- batch tile: multiple of 16, VMEM-aware, always >= 2 grid steps ----
    if b_tile is None:
        rows_target = max(128, min(1024, (8 << 20) // (H_p * 4)))
        b_tile = max(16, _round_up(rows_target // N_pad, 16))
    else:
        b_tile = max(16, _round_up(b_tile, 16))
    b_tile = min(b_tile, max(16, _round_up((B + 1) // 2, 16)))
    B_pad = max(_round_up(B, b_tile), 2 * b_tile)  # >= 2 tiles (v7x megacore)
    num_tiles = B_pad // b_tile
    rows = b_tile * N_pad

    # ---- plain-JAX glue: fold mask into a spare column, pad batch/set dims ----
    xm = jnp.concatenate(
        [x.astype(jnp.float32), mask.astype(jnp.float32)[..., None]], axis=-1)
    xm = jnp.pad(xm, ((0, B_pad - B), (0, N_pad - N), (0, 0)))
    xm = xm.reshape(B_pad * N_pad, D_in + 1)       # raw f32, no lane padding

    inv_sizes = 1.0 / jnp.clip(
        jnp.sum(mask.astype(jnp.float32), axis=1, keepdims=True), 1.0, None)
    inv_sizes = jnp.pad(inv_sizes, ((0, B_pad - B), (0, 0)))

    w1_p = jnp.pad(w1, ((0, 0), (0, H_p - H))).astype(jnp.bfloat16)
    b1_p = jnp.pad(b1, ((0, 0), (0, H_p - H))).astype(jnp.float32)
    w2_p = jnp.pad(w2, ((0, H_p - H), (0, H_p - H))).astype(jnp.bfloat16)
    b2_p = jnp.pad(b2, ((0, 0), (0, H_p - H))).astype(jnp.float32)
    w3_p = jnp.pad(w3, ((0, H_p - H), (0, H_p - H))).astype(jnp.bfloat16)
    b3_p = jnp.pad(b3, ((0, 0), (0, H_p - H))).astype(jnp.float32)
    w4_p = jnp.pad(w4, ((0, H_p - H), (0, D_out_p - D_out))).astype(jnp.bfloat16)
    b4_p = jnp.pad(b4, ((0, 0), (0, D_out_p - D_out))).astype(jnp.float32)
    residents = (w1_p, b1_p, w2_p, b2_p, w3_p, b3_p, w4_p, b4_p)

    # ---- cost estimate (no seg matmul term anymore) ----
    rows_total = B_pad * N_pad
    flops = (2 * rows_total * (D_in * H_p + H_p * H_p)         # phi GEMMs
             + 3 * rows_total * H_p                            # relu+mask+sum
             + 2 * B_pad * (H_p * H_p + H_p * D_out_p))        # rho GEMMs
    bytes_accessed = (xm.size * 4 + inv_sizes.size * 4
                      + sum(r.size * r.dtype.itemsize for r in residents)
                      + B_pad * D_out_p * 4)
    cost = pl.CostEstimate(flops=int(flops), transcendentals=0,
                           bytes_accessed=int(bytes_accessed))

    kernel = functools.partial(_deepset_kernel, n_pad=N_pad, d_in=D_in)

    def build_call(single_buffer_residents):
        def resident(arr):
            idx = lambda i: (0, 0)
            if single_buffer_residents and hasattr(pl, "Buffered"):
                try:
                    return pl.BlockSpec(arr.shape, idx,
                                        pipeline_mode=pl.Buffered(1))
                except TypeError:
                    pass
            return pl.BlockSpec(arr.shape, idx)

        in_specs = [
            pl.BlockSpec((rows, D_in + 1), lambda i: (i, 0)),   # x (+mask col)
            pl.BlockSpec((b_tile, 1), lambda i: (i, 0)),        # 1/set_size
        ] + [resident(r) for r in residents]
        out_spec = pl.BlockSpec((b_tile, D_out_p), lambda i: (i, 0))

        # Footprint-derived VMEM limit: double-buffered streams, residents
        # single- (or double-) buffered, f32 h temporaries; headroom but well
        # under v7x's 64 MiB per TensorCore.
        res_bytes = sum(_vmem_tile_bytes(r.shape, r.dtype) for r in residents)
        stream_bytes = (_vmem_tile_bytes((rows, D_in + 1), jnp.float32)
                        + _vmem_tile_bytes((b_tile, 1), jnp.float32)
                        + _vmem_tile_bytes((b_tile, D_out_p), jnp.float32))
        res_factor = 1 if single_buffer_residents else 2
        scratch_bytes = 4 * rows * H_p * 4
        vmem_limit = int(1.5 * (res_factor * res_bytes + 2 * stream_bytes
                                + scratch_bytes)) + (4 << 20)
        vmem_limit = min(max(vmem_limit, 16 << 20), 56 << 20)

        return pl.pallas_call(
            kernel,
            out_shape=jax.ShapeDtypeStruct((B_pad, D_out_p), jnp.float32),
            grid=(num_tiles,),
            in_specs=in_specs,
            out_specs=out_spec,
            compiler_params=pltpu.CompilerParams(
                dimension_semantics=("parallel",),   # shard tiles across TCs
                vmem_limit_bytes=int(vmem_limit),
            ),
            cost_estimate=cost,
        )

    args = (xm, inv_sizes) + residents
    try:
        out_p = build_call(True)(*args)
    except Exception:
        # pl.Buffered(1) not supported on this jax version -> default buffering
        out_p = build_call(False)(*args)

    return out_p[:B, :D_out]


def init_params(key, input_dim, hidden_dim, output_dim):
    """Deterministic PyTorch-Linear-style init. Weights stored (in, out)."""
    def linear(k, fan_in, fan_out):
        kw, kb = jax.random.split(k)
        bound = 1.0 / jnp.sqrt(fan_in)
        w = jax.random.uniform(kw, (fan_in, fan_out), jnp.float32, -bound, bound)
        b = jax.random.uniform(kb, (1, fan_out), jnp.float32, -bound, bound)
        return w, b

    k1, k2, k3, k4 = jax.random.split(key, 4)
    w1, b1 = linear(k1, input_dim, hidden_dim)   # phi[0]
    w2, b2 = linear(k2, hidden_dim, hidden_dim)  # phi[2]
    w3, b3 = linear(k3, hidden_dim, hidden_dim)  # rho[0]
    w4, b4 = linear(k4, hidden_dim, output_dim)  # rho[2]
    return (w1, b1, w2, b2, w3, b3, w4, b4)


def deepset_reference(x, mask, params):
    w1, b1, w2, b2, w3, b3, w4, b4 = params
    h = jax.nn.relu(x @ w1 + b1)
    h = jax.nn.relu(h @ w2 + b2)
    h = h * mask[:, :, None]
    x_sum = jnp.sum(h, axis=1)
    sizes = jnp.clip(jnp.sum(mask, axis=1, keepdims=True), 1.0, None)
    x_mean = x_sum / sizes
    r = jax.nn.relu(x_mean @ w3 + b3)
    return r @ w4 + b4


if __name__ == "__main__":
    B, N, D_in, H, D_out = 2, 8, 16, 32, 4

    key = jax.random.PRNGKey(0)
    kx, km, kp = jax.random.split(key, 3)

    x = jax.random.normal(kx, (B, N, D_in), jnp.float32)
    mask = (jax.random.uniform(km, (B, N)) > 0.3).astype(jnp.float32)
    params = init_params(kp, D_in, H, D_out)

    out = deepset_forward(x, mask, params)
    out = jax.block_until_ready(out)

    ref = deepset_reference(x, mask, params)
    assert out.shape == (B, D_out)
    # bf16 GEMMs (phi + rho) with f32 accumulation -> loosened tolerance vs f32 ref
    assert jnp.allclose(out, ref, atol=2e-2, rtol=2e-2), "mismatch vs reference"

    print("KERNEL_OK")
</pallas_src>

<mosaic_0001>
module attributes {stable_mosaic.version = 11 : i64} {
  func.func @_deepset_kernel(%arg0: i32, %arg1: memref<128x17xf32, #tpu.memory_space<vmem>>, %arg2: memref<16x1xf32, #tpu.memory_space<vmem>>, %arg3: memref<16x128xbf16, #tpu.memory_space<vmem>>, %arg4: memref<1x128xf32, #tpu.memory_space<vmem>>, %arg5: memref<128x128xbf16, #tpu.memory_space<vmem>>, %arg6: memref<1x128xf32, #tpu.memory_space<vmem>>, %arg7: memref<128x128xbf16, #tpu.memory_space<vmem>>, %arg8: memref<1x128xf32, #tpu.memory_space<vmem>>, %arg9: memref<128x128xbf16, #tpu.memory_space<vmem>>, %arg10: memref<1x128xf32, #tpu.memory_space<vmem>>, %arg11: memref<16x128xf32, #tpu.memory_space<vmem>>) attributes {dimension_semantics = [#tpu.dimension_semantics<parallel>], iteration_bounds = array<i64: 2>, scalar_prefetch = 0 : i64, scratch_operands = 0 : i64, tpu.core_type = #tpu.core_type<tc>, window_params = [{transform_indices = @transform_0, window_bounds = array<i64: 128, 17>}, {transform_indices = @transform_1, window_bounds = array<i64: 16, 1>}, {pipeline_mode = #tpu.pipeline_mode<synchronous>, transform_indices = @transform_2, window_bounds = array<i64: 16, 128>}, {pipeline_mode = #tpu.pipeline_mode<synchronous>, transform_indices = @transform_3, window_bounds = array<i64: 1, 128>}, {pipeline_mode = #tpu.pipeline_mode<synchronous>, transform_indices = @transform_4, window_bounds = array<i64: 128, 128>}, {pipeline_mode = #tpu.pipeline_mode<synchronous>, transform_indices = @transform_5, window_bounds = array<i64: 1, 128>}, {pipeline_mode = #tpu.pipeline_mode<synchronous>, transform_indices = @transform_6, window_bounds = array<i64: 128, 128>}, {pipeline_mode = #tpu.pipeline_mode<synchronous>, transform_indices = @transform_7, window_bounds = array<i64: 1, 128>}, {pipeline_mode = #tpu.pipeline_mode<synchronous>, transform_indices = @transform_8, window_bounds = array<i64: 128, 128>}, {pipeline_mode = #tpu.pipeline_mode<synchronous>, transform_indices = @transform_9, window_bounds = array<i64: 1, 128>}, {transform_indices = @transform_10, window_bounds = array<i64: 16, 128>}]} {
    %c0 = arith.constant 0 : index
    %c0_0 = arith.constant 0 : index
    %0 = vector.load %arg1[%c0, %c0_0] : memref<128x17xf32, #tpu.memory_space<vmem>>, vector<128x17xf32>
    %1 = vector.extract_strided_slice %0 {offsets = [0, 0], sizes = [128, 16], strides = [1, 1]} : vector<128x17xf32> to vector<128x16xf32>
    %2 = arith.truncf %1 : vector<128x16xf32> to vector<128x16xbf16>
    %3 = vector.extract_strided_slice %0 {offsets = [0, 16], sizes = [128, 1], strides = [1, 1]} : vector<128x17xf32> to vector<128x1xf32>
    %c0_1 = arith.constant 0 : index
    %c0_2 = arith.constant 0 : index
    %4 = vector.load %arg3[%c0_1, %c0_2] : memref<16x128xbf16, #tpu.memory_space<vmem>>, vector<16x128xbf16>
    %cst = arith.constant dense<0.000000e+00> : vector<128x128xf32>
    %5 = tpu.matmul %2, %4, %cst {dimension_numbers = #tpu.dot_dimension_numbers<[1], [0], [0], [1], [0, 0, 1, 1], [], []>} : vector<128x16xbf16>, vector<16x128xbf16>, vector<128x128xf32> -> vector<128x128xf32>
    %c0_3 = arith.constant 0 : index
    %c0_4 = arith.constant 0 : index
    %6 = vector.load %arg4[%c0_3, %c0_4] : memref<1x128xf32, #tpu.memory_space<vmem>>, vector<1x128xf32>
    %7 = vector.broadcast %6 : vector<1x128xf32> to vector<128x128xf32>
    %8 = arith.addf %5, %7 : vector<128x128xf32>
    %cst_5 = arith.constant 0.000000e+00 : f32
    %9 = vector.broadcast %cst_5 : f32 to vector<128x128xf32>
    %10 = arith.maximumf %8, %9 : vector<128x128xf32>
    %11 = arith.truncf %10 : vector<128x128xf32> to vector<128x128xbf16>
    %c0_6 = arith.constant 0 : index
    %c0_7 = arith.constant 0 : index
    %12 = vector.load %arg5[%c0_6, %c0_7] : memref<128x128xbf16, #tpu.memory_space<vmem>>, vector<128x128xbf16>
    %cst_8 = arith.constant dense<0.000000e+00> : vector<128x128xf32>
    %13 = tpu.matmul %11, %12, %cst_8 {dimension_numbers = #tpu.dot_dimension_numbers<[1], [0], [0], [1], [0, 0, 1, 1], [], []>} : vector<128x128xbf16>, vector<128x128xbf16>, vector<128x128xf32> -> vector<128x128xf32>
    %c0_9 = arith.constant 0 : index
    %c0_10 = arith.constant 0 : index
    %14 = vector.load %arg6[%c0_9, %c0_10] : memref<1x128xf32, #tpu.memory_space<vmem>>, vector<1x128xf32>
    %15 = vector.broadcast %14 : vector<1x128xf32> to vector<128x128xf32>
    %16 = arith.addf %13, %15 : vector<128x128xf32>
    %cst_11 = arith.constant 0.000000e+00 : f32
    %17 = vector.broadcast %cst_11 : f32 to vector<128x128xf32>
    %18 = arith.maximumf %16, %17 : vector<128x128xf32>
    %19 = vector.broadcast %3 : vector<128x1xf32> to vector<128x128xf32>
    %20 = arith.mulf %18, %19 : vector<128x128xf32>
    %21 = vector.shape_cast %20 : vector<128x128xf32> to vector<16x8x128xf32>
    %cst_12 = arith.constant dense<0.000000e+00> : vector<16x128xf32>
    %22 = vector.multi_reduction <add>, %21, %cst_12 [1] : vector<16x8x128xf32> to vector<16x128xf32>
    %c0_13 = arith.constant 0 : index
    %c0_14 = arith.constant 0 : index
    %23 = vector.load %arg2[%c0_13, %c0_14] : memref<16x1xf32, #tpu.memory_space<vmem>>, vector<16x1xf32>
    %24 = vector.broadcast %23 : vector<16x1xf32> to vector<16x128xf32>
    %25 = arith.mulf %22, %24 : vector<16x128xf32>
    %26 = arith.truncf %25 : vector<16x128xf32> to vector<16x128xbf16>
    %c0_15 = arith.constant 0 : index
    %c0_16 = arith.constant 0 : index
    %27 = vector.load %arg7[%c0_15, %c0_16] : memref<128x128xbf16, #tpu.memory_space<vmem>>, vector<128x128xbf16>
    %cst_17 = arith.constant dense<0.000000e+00> : vector<16x128xf32>
    %28 = tpu.matmul %26, %27, %cst_17 {dimension_numbers = #tpu.dot_dimension_numbers<[1], [0], [0], [1], [0, 0, 1, 1], [], []>} : vector<16x128xbf16>, vector<128x128xbf16>, vector<16x128xf32> -> vector<16x128xf32>
    %c0_18 = arith.constant 0 : index
    %c0_19 = arith.constant 0 : index
    %29 = vector.load %arg8[%c0_18, %c0_19] : memref<1x128xf32, #tpu.memory_space<vmem>>, vector<1x128xf32>
    %30 = vector.broadcast %29 : vector<1x128xf32> to vector<16x128xf32>
    %31 = arith.addf %28, %30 : vector<16x128xf32>
    %cst_20 = arith.constant 0.000000e+00 : f32
    %32 = vector.broadcast %cst_20 : f32 to vector<16x128xf32>
    %33 = arith.maximumf %31, %32 : vector<16x128xf32>
    %34 = arith.truncf %33 : vector<16x128xf32> to vector<16x128xbf16>
    %c0_21 = arith.constant 0 : index
    %c0_22 = arith.constant 0 : index
    %35 = vector.load %arg9[%c0_21, %c0_22] : memref<128x128xbf16, #tpu.memory_space<vmem>>, vector<128x128xbf16>
    %cst_23 = arith.constant dense<0.000000e+00> : vector<16x128xf32>
    %36 = tpu.matmul %34, %35, %cst_23 {dimension_numbers = #tpu.dot_dimension_numbers<[1], [0], [0], [1], [0, 0, 1, 1], [], []>} : vector<16x128xbf16>, vector<128x128xbf16>, vector<16x128xf32> -> vector<16x128xf32>
    %c0_24 = arith.constant 0 : index
    %c0_25 = arith.constant 0 : index
    %37 = vector.load %arg10[%c0_24, %c0_25] : memref<1x128xf32, #tpu.memory_space<vmem>>, vector<1x128xf32>
    %38 = vector.broadcast %37 : vector<1x128xf32> to vector<16x128xf32>
    %39 = arith.addf %36, %38 : vector<16x128xf32>
    %c0_26 = arith.constant 0 : index
    %c0_27 = arith.constant 0 : index
    %40 = vector.load %arg11[%c0_26, %c0_27] : memref<16x128xf32, #tpu.memory_space<vmem>>, vector<16x128xf32>
    tpu.vector_store %arg11[%c0_26, %c0_27], %39 {strides = array<i32>} : memref<16x128xf32, #tpu.memory_space<vmem>>, vector<16x128xf32>,
    return
  }
  func.func @transform_0(%arg0: i32) -> (i32, i32) {
    %c0_i32 = arith.constant 0 : i32
    %c0_i32_0 = arith.constant 0 : i32
    return %arg0, %c0_i32 : i32, i32
  }
  func.func @transform_1(%arg0: i32) -> (i32, i32) {
    %c0_i32 = arith.constant 0 : i32
    %c0_i32_0 = arith.constant 0 : i32
    return %arg0, %c0_i32 : i32, i32
  }
  func.func @transform_2(%arg0: i32) -> (i32, i32) {
    %c0_i32 = arith.constant 0 : i32
    %c0_i32_0 = arith.constant 0 : i32
    %c0_i32_1 = arith.constant 0 : i32
    return %c0_i32, %c0_i32_0 : i32, i32
  }
  func.func @transform_3(%arg0: i32) -> (i32, i32) {
    %c0_i32 = arith.constant 0 : i32
    %c0_i32_0 = arith.constant 0 : i32
    %c0_i32_1 = arith.constant 0 : i32
    return %c0_i32, %c0_i32_0 : i32, i32
  }
  func.func @transform_4(%arg0: i32) -> (i32, i32) {
    %c0_i32 = arith.constant 0 : i32
    %c0_i32_0 = arith.constant 0 : i32
    %c0_i32_1 = arith.constant 0 : i32
    return %c0_i32, %c0_i32_0 : i32, i32
  }
  func.func @transform_5(%arg0: i32) -> (i32, i32) {
    %c0_i32 = arith.constant 0 : i32
    %c0_i32_0 = arith.constant 0 : i32
    %c0_i32_1 = arith.constant 0 : i32
    return %c0_i32, %c0_i32_0 : i32, i32
  }
  func.func @transform_6(%arg0: i32) -> (i32, i32) {
    %c0_i32 = arith.constant 0 : i32
    %c0_i32_0 = arith.constant 0 : i32
    %c0_i32_1 = arith.constant 0 : i32
    return %c0_i32, %c0_i32_0 : i32, i32
  }
  func.func @transform_7(%arg0: i32) -> (i32, i32) {
    %c0_i32 = arith.constant 0 : i32
    %c0_i32_0 = arith.constant 0 : i32
    %c0_i32_1 = arith.constant 0 : i32
    return %c0_i32, %c0_i32_0 : i32, i32
  }
  func.func @transform_8(%arg0: i32) -> (i32, i32) {
    %c0_i32 = arith.constant 0 : i32
    %c0_i32_0 = arith.constant 0 : i32
    %c0_i32_1 = arith.constant 0 : i32
    return %c0_i32, %c0_i32_0 : i32, i32
  }
  func.func @transform_9(%arg0: i32) -> (i32, i32) {
    %c0_i32 = arith.constant 0 : i32
    %c0_i32_0 = arith.constant 0 : i32
    %c0_i32_1 = arith.constant 0 : i32
    return %c0_i32, %c0_i32_0 : i32, i32
  }
  func.func @transform_10(%arg0: i32) -> (i32, i32) {
    %c0_i32 = arith.constant 0 : i32
    %c0_i32_0 = arith.constant 0 : i32
    return %arg0, %c0_i32 : i32, i32
  }
}

module attributes {stable_mosaic.version = 11 : i64} {
  func.func @_deepset_kernel(%arg0: i32, %arg1: memref<128x17xf32, #tpu.memory_space<vmem>>, %arg2: memref<16x1xf32, #tpu.memory_space<vmem>>, %arg3: memref<16x128xbf16, #tpu.memory_space<vmem>>, %arg4: memref<1x128xf32, #tpu.memory_space<vmem>>, %arg5: memref<128x128xbf16, #tpu.memory_space<vmem>>, %arg6: memref<1x128xf32, #tpu.memory_space<vmem>>, %arg7: memref<128x128xbf16, #tpu.memory_space<vmem>>, %arg8: memref<1x128xf32, #tpu.memory_space<vmem>>, %arg9: memref<128x128xbf16, #tpu.memory_space<vmem>>, %arg10: memref<1x128xf32, #tpu.memory_space<vmem>>, %arg11: memref<16x128xf32, #tpu.memory_space<vmem>>) attributes {dimension_semantics = [#tpu.dimension_semantics<parallel>], iteration_bounds = array<i64: 2>, scalar_prefetch = 0 : i64, scratch_operands = 0 : i64, tpu.core_type = #tpu.core_type<tc>, window_params = [{transform_indices = @transform_0, window_bounds = array<i64: 128, 17>}, {transform_indices = @transform_1, window_bounds = array<i64: 16, 1>}, {pipeline_mode = #tpu.pipeline_mode<synchronous>, transform_indices = @transform_2, window_bounds = array<i64: 16, 128>}, {pipeline_mode = #tpu.pipeline_mode<synchronous>, transform_indices = @transform_3, window_bounds = array<i64: 1, 128>}, {pipeline_mode = #tpu.pipeline_mode<synchronous>, transform_indices = @transform_4, window_bounds = array<i64: 128, 128>}, {pipeline_mode = #tpu.pipeline_mode<synchronous>, transform_indices = @transform_5, window_bounds = array<i64: 1, 128>}, {pipeline_mode = #tpu.pipeline_mode<synchronous>, transform_indices = @transform_6, window_bounds = array<i64: 128, 128>}, {pipeline_mode = #tpu.pipeline_mode<synchronous>, transform_indices = @transform_7, window_bounds = array<i64: 1, 128>}, {pipeline_mode = #tpu.pipeline_mode<synchronous>, transform_indices = @transform_8, window_bounds = array<i64: 128, 128>}, {pipeline_mode = #tpu.pipeline_mode<synchronous>, transform_indices = @transform_9, window_bounds = array<i64: 1, 128>}, {transform_indices = @transform_10, window_bounds = array<i64: 16, 128>}]} {
    %c0 = arith.constant 0 : index
    %c0_0 = arith.constant 0 : index
    %0 = vector.load %arg1[%c0, %c0_0] : memref<128x17xf32, #tpu.memory_space<vmem>>, vector<128x17xf32>
    %1 = vector.extract_strided_slice %0 {offsets = [0, 0], sizes = [128, 16], strides = [1, 1]} : vector<128x17xf32> to vector<128x16xf32>
    %2 = arith.truncf %1 : vector<128x16xf32> to vector<128x16xbf16>
    %3 = vector.extract_strided_slice %0 {offsets = [0, 16], sizes = [128, 1], strides = [1, 1]} : vector<128x17xf32> to vector<128x1xf32>
    %c0_1 = arith.constant 0 : index
    %c0_2 = arith.constant 0 : index
    %4 = vector.load %arg3[%c0_1, %c0_2] : memref<16x128xbf16, #tpu.memory_space<vmem>>, vector<16x128xbf16>
    %cst = arith.constant dense<0.000000e+00> : vector<128x128xf32>
    %5 = tpu.matmul %2, %4, %cst {dimension_numbers = #tpu.dot_dimension_numbers<[1], [0], [0], [1], [0, 0, 1, 1], [], []>} : vector<128x16xbf16>, vector<16x128xbf16>, vector<128x128xf32> -> vector<128x128xf32>
    %c0_3 = arith.constant 0 : index
    %c0_4 = arith.constant 0 : index
    %6 = vector.load %arg4[%c0_3, %c0_4] : memref<1x128xf32, #tpu.memory_space<vmem>>, vector<1x128xf32>
    %7 = vector.broadcast %6 : vector<1x128xf32> to vector<128x128xf32>
    %8 = arith.addf %5, %7 : vector<128x128xf32>
    %cst_5 = arith.constant 0.000000e+00 : f32
    %9 = vector.broadcast %cst_5 : f32 to vector<128x128xf32>
    %10 = arith.maximumf %8, %9 : vector<128x128xf32>
    %11 = arith.truncf %10 : vector<128x128xf32> to vector<128x128xbf16>
    %c0_6 = arith.constant 0 : index
    %c0_7 = arith.constant 0 : index
    %12 = vector.load %arg5[%c0_6, %c0_7] : memref<128x128xbf16, #tpu.memory_space<vmem>>, vector<128x128xbf16>
    %cst_8 = arith.constant dense<0.000000e+00> : vector<128x128xf32>
    %13 = tpu.matmul %11, %12, %cst_8 {dimension_numbers = #tpu.dot_dimension_numbers<[1], [0], [0], [1], [0, 0, 1, 1], [], []>} : vector<128x128xbf16>, vector<128x128xbf16>, vector<128x128xf32> -> vector<128x128xf32>
    %c0_9 = arith.constant 0 : index
    %c0_10 = arith.constant 0 : index
    %14 = vector.load %arg6[%c0_9, %c0_10] : memref<1x128xf32, #tpu.memory_space<vmem>>, vector<1x128xf32>
    %15 = vector.broadcast %14 : vector<1x128xf32> to vector<128x128xf32>
    %16 = arith.addf %13, %15 : vector<128x128xf32>
    %cst_11 = arith.constant 0.000000e+00 : f32
    %17 = vector.broadcast %cst_11 : f32 to vector<128x128xf32>
    %18 = arith.maximumf %16, %17 : vector<128x128xf32>
    %19 = vector.broadcast %3 : vector<128x1xf32> to vector<128x128xf32>
    %20 = arith.mulf %18, %19 : vector<128x128xf32>
    %21 = vector.shape_cast %20 : vector<128x128xf32> to vector<16x8x128xf32>
    %cst_12 = arith.constant dense<0.000000e+00> : vector<16x128xf32>
    %22 = vector.multi_reduction <add>, %21, %cst_12 [1] : vector<16x8x128xf32> to vector<16x128xf32>
    %c0_13 = arith.constant 0 : index
    %c0_14 = arith.constant 0 : index
    %23 = vector.load %arg2[%c0_13, %c0_14] : memref<16x1xf32, #tpu.memory_space<vmem>>, vector<16x1xf32>
    %24 = vector.broadcast %23 : vector<16x1xf32> to vector<16x128xf32>
    %25 = arith.mulf %22, %24 : vector<16x128xf32>
    %26 = arith.truncf %25 : vector<16x128xf32> to vector<16x128xbf16>
    %c0_15 = arith.constant 0 : index
    %c0_16 = arith.constant 0 : index
    %27 = vector.load %arg7[%c0_15, %c0_16] : memref<128x128xbf16, #tpu.memory_space<vmem>>, vector<128x128xbf16>
    %cst_17 = arith.constant dense<0.000000e+00> : vector<16x128xf32>
    %28 = tpu.matmul %26, %27, %cst_17 {dimension_numbers = #tpu.dot_dimension_numbers<[1], [0], [0], [1], [0, 0, 1, 1], [], []>} : vector<16x128xbf16>, vector<128x128xbf16>, vector<16x128xf32> -> vector<16x128xf32>
    %c0_18 = arith.constant 0 : index
    %c0_19 = arith.constant 0 : index
    %29 = vector.load %arg8[%c0_18, %c0_19] : memref<1x128xf32, #tpu.memory_space<vmem>>, vector<1x128xf32>
    %30 = vector.broadcast %29 : vector<1x128xf32> to vector<16x128xf32>
    %31 = arith.addf %28, %30 : vector<16x128xf32>
    %cst_20 = arith.constant 0.000000e+00 : f32
    %32 = vector.broadcast %cst_20 : f32 to vector<16x128xf32>
    %33 = arith.maximumf %31, %32 : vector<16x128xf32>
    %34 = arith.truncf %33 : vector<16x128xf32> to vector<16x128xbf16>
    %c0_21 = arith.constant 0 : index
    %c0_22 = arith.constant 0 : index
    %35 = vector.load %arg9[%c0_21, %c0_22] : memref<128x128xbf16, #tpu.memory_space<vmem>>, vector<128x128xbf16>
    %cst_23 = arith.constant dense<0.000000e+00> : vector<16x128xf32>
    %36 = tpu.matmul %34, %35, %cst_23 {dimension_numbers = #tpu.dot_dimension_numbers<[1], [0], [0], [1], [0, 0, 1, 1], [], []>} : vector<16x128xbf16>, vector<128x128xbf16>, vector<16x128xf32> -> vector<16x128xf32>
    %c0_24 = arith.constant 0 : index
    %c0_25 = arith.constant 0 : index
    %37 = vector.load %arg10[%c0_24, %c0_25] : memref<1x128xf32, #tpu.memory_space<vmem>>, vector<1x128xf32>
    %38 = vector.broadcast %37 : vector<1x128xf32> to vector<16x128xf32>
    %39 = arith.addf %36, %38 : vector<16x128xf32>
    %c0_26 = arith.constant 0 : index
    %c0_27 = arith.constant 0 : index
    %40 = vector.load %arg11[%c0_26, %c0_27] : memref<16x128xf32, #tpu.memory_space<vmem>>, vector<16x128xf32>
    tpu.vector_store %arg11[%c0_26, %c0_27], %39 {strides = array<i32>} : memref<16x128xf32, #tpu.memory_space<vmem>>, vector<16x128xf32>,
    return
  }
  func.func @transform_0(%arg0: i32) -> (i32, i32) {
    %c0_i32 = arith.constant 0 : i32
    %c0_i32_0 = arith.constant 0 : i32
    return %arg0, %c0_i32 : i32, i32
  }
  func.func @transform_1(%arg0: i32) -> (i32, i32) {
    %c0_i32 = arith.constant 0 : i32
    %c0_i32_0 = arith.constant 0 : i32
    return %arg0, %c0_i32 : i32, i32
  }
  func.func @transform_2(%arg0: i32) -> (i32, i32) {
    %c0_i32 = arith.constant 0 : i32
    %c0_i32_0 = arith.constant 0 : i32
    %c0_i32_1 = arith.constant 0 : i32
    return %c0_i32, %c0_i32_0 : i32, i32
  }
  func.func @transform_3(%arg0: i32) -> (i32, i32) {
    %c0_i32 = arith.constant 0 : i32
    %c0_i32_0 = arith.constant 0 : i32
    %c0_i32_1 = arith.constant 0 : i32
    return %c0_i32, %c0_i32_0 : i32, i32
  }
  func.func @transform_4(%arg0: i32) -> (i32, i32) {
    %c0_i32 = arith.constant 0 : i32
    %c0_i32_0 = arith.constant 0 : i32
    %c0_i32_1 = arith.constant 0 : i32
    return %c0_i32, %c0_i32_0 : i32, i32
  }
  func.func @transform_5(%arg0: i32) -> (i32, i32) {
    %c0_i32 = arith.constant 0 : i32
    %c0_i32_0 = arith.constant 0 : i32
    %c0_i32_1 = arith.constant 0 : i32
    return %c0_i32, %c0_i32_0 : i32, i32
  }
  func.func @transform_6(%arg0: i32) -> (i32, i32) {
    %c0_i32 = arith.constant 0 : i32
    %c0_i32_0 = arith.constant 0 : i32
    %c0_i32_1 = arith.constant 0 : i32
    return %c0_i32, %c0_i32_0 : i32, i32
  }
  func.func @transform_7(%arg0: i32) -> (i32, i32) {
    %c0_i32 = arith.constant 0 : i32
    %c0_i32_0 = arith.constant 0 : i32
    %c0_i32_1 = arith.constant 0 : i32
    return %c0_i32, %c0_i32_0 : i32, i32
  }
  func.func @transform_8(%arg0: i32) -> (i32, i32) {
    %c0_i32 = arith.constant 0 : i32
    %c0_i32_0 = arith.constant 0 : i32
    %c0_i32_1 = arith.constant 0 : i32
    return %c0_i32, %c0_i32_0 : i32, i32
  }
  func.func @transform_9(%arg0: i32) -> (i32, i32) {
    %c0_i32 = arith.constant 0 : i32
    %c0_i32_0 = arith.constant 0 : i32
    %c0_i32_1 = arith.constant 0 : i32
    return %c0_i32, %c0_i32_0 : i32, i32
  }
  func.func @transform_10(%arg0: i32) -> (i32, i32) {
    %c0_i32 = arith.constant 0 : i32
    %c0_i32_0 = arith.constant 0 : i32
    return %arg0, %c0_i32 : i32, i32
  }
}

</mosaic_0001>

<bundles_post_ra>
// kernel: tpu_custom_call.1
= control target key start
LH: loop header
LB: loop body
LE: loop exit
PB: predicated region body
PF: predicated region fallthrough
CT: control target
= control target key end

     0   :  { %15 = vsyncpa [#allocation3], 0  ;;  %s2160_s0 = inlined_call_operand.vmem [shape: f32[256,17], index: 0, kind: input, shape index: {}]   ;;  %s2161_s1 = inlined_call_operand.vmem [shape: f32[32,1], index: 1, kind: input, shape index: {}]   ;;  %s2162_s2 = inlined_call_operand.vmem [shape: bf16[16,128], index: 2, kind: input, shape index: {}]   ;;  %s2163_s3 = inlined_call_operand.vmem [shape: f32[1,128], index: 3, kind: input, shape index: {}]   ;;  %s2164_s4 = inlined_call_operand.vmem [shape: bf16[128,128], index: 4, kind: input, shape index: {}]   ;;  %s2165_s5 = inlined_call_operand.vmem [shape: f32[1,128], index: 5, kind: input, shape index: {}]   ;;  %s2166_s6 = inlined_call_operand.vmem [shape: bf16[128,128], index: 6, kind: input, shape index: {}]   ;;  %s2167_s7 = inlined_call_operand.vmem [shape: f32[1,128], index: 7, kind: input, shape index: {}]   ;;  %s2168_s8 = inlined_call_operand.vmem [shape: bf16[128,128], index: 8, kind: input, shape index: {}]   ;;  %s2169_s9 = inlined_call_operand.vmem [shape: f32[1,128], index: 9, kind: input, shape index: {}]   ;;  %s2170_s10 = inlined_call_operand.hbm [shape: f32[32,128], index: 10, kind: output, shape index: {}]  }
   0x1   :  { %17 = vsyncpa [#allocation3 + $0x1], 0  ;;  %s1788_s13 = smov 0   ;;  %s1790_s14 = smov 0  }
   0x2   :  { %s1792_s15 = smov 0   ;;  %s1794_s16 = smov 0  }
   0x3 LB: > { %s1809_s17 = sadd.s32 4294967295, %s1724_s16   ;;  %s1403_s18 = sadd.s32 4294967294, %s1724_s16   ;;  %s1724_s16 = sphi %s1794_s16, %s2176_s16   ;;  %s1720_s15 = sphi %s1792_s15, %s2175_s15   ;;  %s1716_s14 = sphi %s1790_s14, %s2174_s14   ;;  %s1712_s13 = sphi %s1788_s13, %s2173_s13  }
   0x4   : > { %s1813_s19 = sadd.s32 1, %s1724_s16   ;;  %s250_s20 = sadd.s32 1, %s1720_s15 }
   0x5   : > { %s247_s21 = ssub.s32 %s1724_s16, %s1813_s19  ;;  %p260_p0 = scmp.ne.s32.totalorder %s1720_s15, %s1716_s14 }
   0x6   : > { %p248_p1 = scmp.eq.s32.totalorder %s247_s21, 0  ;;  %p261_p2 = scmp.eq.s32.totalorder %s1809_s17, 1 }
   0x7   : > { %p266_p3 = scmp.ne.s32.totalorder %s1716_s14, %s1712_s13  ;;  %p267_p4 = scmp.eq.s32.totalorder %s1403_s18, 1 }
   0x8   : > { %s1824_s22 = scalar_select %p248_p1, %s1720_s15, %s250_s20  }
   0x9   : > { %p1826_p5 = por %p261_p2, %p260_p0  ;;  %p1830_p6 = por %p267_p4, %p266_p3 }
   0xa   : > { %p1406_p7 = scmp.ge.s32.totalorder %s1724_s16, 1  ;;  %p327_p8 = scmp.lt.s32.totalorder %s1724_s16, 3 }
   0xc   : > { %p328_p9 = pnand %p1406_p7, %p327_p8 }
   0xd   : > { %v1637_v0 = vld [vmem:[%s2162_s2] sm:$0xff] (!%p328_p9)   ;;  %s1408_s27 = sshll.u32 (!%p328_p9), %s1809_s17, 4  ;;  %v1639_v2 = vld [vmem:[%s2164_s4 + $0x8] sm:$0xff] (!%p328_p9)   ;;  %v1640_v3 = vld [vmem:[%s2164_s4 + $0x10] sm:$0xff] (!%p328_p9)   ;;  %vm423_vm0 = vcmask (!%p328_p9), 130048   ;;  %v1726_v33 = vmov (!%p328_p9), 16  }
   0xe   : > { %331 = sbr.rel (%p328_p9) target bundleno = 981 (0x3d5), region = 60  ;;  %p371_p10 = scmp.lt.s32.totalorder (!%p328_p9), %s1408_s27, 31  ;;  %1498 = vmatprep.subr.bf16.mxu0 (!%p328_p9), %v1637_v0  ;;  %v1638_v1 = vld [vmem:[%s2164_s4] sm:$0xff] (!%p328_p9)   ;;  %v1641_v13 = vld [vmem:[%s2164_s4 + $0x18] sm:$0xff] (!%p328_p9)   ;;  %v1643_v21 = vld [vmem:[%s2164_s4 + $0x28] sm:$0xff] (!%p328_p9)   ;;  %1634 = vset.pattern.permute.xlu1 (!%p328_p9), %v1726_v33  ;;  %v1727_v36 = vmov (!%p328_p9), 0  }
   0xf   : > { %1499 = vmatpush3.bf16.msra.mxu0 (!%p328_p9), %v1637_v0  ;;  %1516 = vmatprep.subr.bf16.mxu1 (!%p328_p9), %v1638_v1  ;;  %v1642_v18 = vld [vmem:[%s2164_s4 + $0x20] sm:$0xff] (!%p328_p9)   ;;  %v1644_v31 = vld [vmem:[%s2164_s4 + $0x30] sm:$0xff] (!%p328_p9)   ;;  %v1645_v32 = vld [vmem:[%s2164_s4 + $0x38] sm:$0xff] (!%p328_p9)   ;;  %vm1729_vm1 = vmmov (!%p328_p9), 0   ;;  %vm1073_vm2 = vcmask (!%p328_p9), 1041409   ;;  %vm1076_vm3 = vcmask (!%p328_p9), 1042434  }
  0x10   : > { %1517 = vmatpush3.bf16.msra.mxu1 (!%p328_p9), %v1638_v1  ;;  %1633 = vset.pattern.permute.xlu0 (!%p328_p9), %v1726_v33  ;;  %v1412_v37 = vld [vmem:[%s2163_s3] ss:$0 sm:$0xff] (!%p328_p9)  ;;  %v1648_v33 = vld [vmem:[%s2166_s6 + $0x10] sm:$0xff] (!%p328_p9)   ;;  %vm1079_vm4 = vcmask (!%p328_p9), 1043459   ;;  %vm1082_vm5 = vcmask (!%p328_p9), 1044484   ;;  %vm1085_vm6 = vcmask (!%p328_p9), 1045509  }
  0x11   : > { %1518 = vmatprep.subr.bf16.mxu1 (!%p328_p9), %v1639_v2  ;;  %vm1088_vm7 = vcmask (!%p328_p9), 1046534   ;;  %vm1091_vm8 = vcmask (!%p328_p9), 1047559   ;;  %s367_s26 = sand.u32 (!%p328_p9), 1, %s1716_s14   ;;  %s1454_s11 = sshll.u32 (!%p328_p9), %s1809_s17, 8 }
  0x12   : > { %s2117_s20 = scalar_lea.hbm (!%p328_p9), %s2170_s10, %s1454_s11  ;;  %s2119_s25 = scalar_lea.sflag (!%p328_p9), [#allocation3], %s367_s26 }
  0x14   : > { %1519 = vmatpush3.bf16.msra.mxu1 (!%p328_p9), %v1639_v2 }
  0x15   : > { %s2178_s27 = smov (!%p371_p10, %s1408_s27), 31  ;;  %1520 = vmatprep.subr.bf16.mxu1 %v1640_v3 }
  0x16   : > { %s1409_s12 = sshll.u32 %s2178_s27, 3 }
  0x17   : > { %s1849_s21 = scalar_lea.vmem %s2160_s0, %s1409_s12 }
  0x18   : > { %v384_v4 = vld [vmem:[%s1849_s21] sm:$0xff]  ;;  %v385_v5 = vld [vmem:[%s1849_s21 + $0x8] sm:$0xff]  ;;  %v386_v6 = vld [vmem:[%s1849_s21 + $0x10] sm:$0xff]  ;;  %1521 = vmatpush3.bf16.msra.mxu1 %v1640_v3 }
  0x19   : > { %v400_v7 = vpack.c.bf16 %v385_v5, %v384_v4  ;;  %v387_v8 = vld [vmem:[%s1849_s21 + $0x18] sm:$0xff]  ;;  %v388_v9 = vld [vmem:[%s1849_s21 + $0x20] sm:$0xff]  ;;  %v389_v10 = vld [vmem:[%s1849_s21 + $0x28] sm:$0xff]  ;;  %1522 = vmatprep.subr.bf16.mxu1 %v1641_v13  ;;  %765 = vperm.xlu1 %1634, %v386_v6  }
  0x1a   : > { %v401_v11 = vpack.c.bf16 %v387_v8, %v386_v6  ;;  %v402_v12 = vpack.c.bf16 %v389_v10, %v388_v9  ;;  %v390_v14 = vld [vmem:[%s1849_s21 + $0x30] sm:$0xff]  ;;  %v391_v15 = vld [vmem:[%s1849_s21 + $0x38] sm:$0xff]  ;;  %v392_v16 = vld [vmem:[%s1849_s21 + $0x40] sm:$0xff]  ;;  %760 = vperm.xlu0 %1633, %v385_v5  }
  0x1b   : > { %1500 = vmatprep.mubr.msk.bf16.mxu0 %vm423_vm0, %v400_v7  ;;  %v393_v17 = vld [vmem:[%s1849_s21 + $0x48] sm:$0xff]  ;;  %v403_v19 = vpack.c.bf16 %v391_v15, %v390_v14  ;;  %v394_v22 = vld [vmem:[%s1849_s21 + $0x50] sm:$0xff]  ;;  %v395_v23 = vld [vmem:[%s1849_s21 + $0x58] sm:$0xff] }
  0x1c   : > { %1501 = vmatmul.mubr.msk.bf16.vlgmr.msra.gmra.mrb[0].mxu0 %vm423_vm0, %v401_v11  ;;  %v404_v20 = vpack.c.bf16 %v393_v17, %v392_v16  ;;  %1523 = vmatpush3.bf16.msra.mxu1 %v1641_v13  ;;  %v396_v24 = vld [vmem:[%s1849_s21 + $0x60] sm:$0xff]  ;;  %v397_v25 = vld [vmem:[%s1849_s21 + $0x68] sm:$0xff]  ;;  %v405_v26 = vpack.c.bf16 %v395_v23, %v394_v22  ;;  %v398_v28 = vld [vmem:[%s1849_s21 + $0x70] sm:$0xff] }
  0x1d   : > { %1504 = vmatprep.mubr.msk.bf16.mxu0 %vm423_vm0, %v402_v12  ;;  %1524 = vmatprep.subr.bf16.mxu1 %v1642_v18  ;;  %v406_v27 = vpack.c.bf16 %v397_v25, %v396_v24  ;;  %v399_v29 = vld [vmem:[%s1849_s21 + $0x78] sm:$0xff]  ;;  %s1410_s21 = sshll.u32 %s1809_s17, 1 }
  0x1e   : > { %v407_v30 = vpack.c.bf16 %v399_v29, %v398_v28  ;;  %805 = vperm.xlu1 %1634, %v394_v22   ;;  %800 = vperm.xlu0 %1633, %v393_v17   ;;  %p377_p11 = scmp.lt.s32.totalorder %s1410_s21, 3 }
  0x20   : > { %1525 = vmatpush3.bf16.msra.mxu1 %v1642_v18  ;;  %s2180_s21 = smov (!%p377_p11, %s1410_s21), 3 }
  0x21   : > { %1526 = vmatprep.subr.bf16.mxu1 %v1643_v21  ;;  %s1411_s27 = sshll.u32 %s2180_s21, 3  ;;  %s1407_s21 = sshll.u32 %s367_s26, 4 }
  0x22   : > { %770 = vperm.xlu1 %1634, %v387_v8   ;;  %755 = vperm.xlu0 %1633, %v384_v4   ;;  %s380_s30 = scalar_lea.vmem %s2161_s1, %s1411_s27  ;;  %s369_s29 = scalar_lea.vmem [#allocation2], %s1407_s21 }
  0x23   : > { %v945_v34 = vld [vmem:[%s380_s30] sm:$0xff]  ;;  %v946_v35 = vld [vmem:[%s380_s30 + $0x8] sm:$0xff]  ;;  %s1329_s30 = sshll.u32 %s369_s29, 4  ;;  %s1730_s21 = smov [#allocation2]   ;;  %s2112_s30 = int_to_ptr.vmem [resolvable:$true] %s1329_s30 }
  0x24   : > { %1505 = vmatmul.mubr.msk.bf16.gmra.mrb[4].mxu0 %vm423_vm0, %v403_v19  ;;  %1527 = vmatpush3.bf16.msra.mxu1 %v1643_v21  ;;  %s1662_s17 = scalar_lea.vmem %s2112_s30, 256  ;;  %s1666_s27 = sshll.u32 %s1730_s21, 4  ;;  %s1667_s27 = int_to_ptr.vmem [resolvable:$false] %s1666_s27 }
  0x25   : > { %1508 = vmatprep.mubr.msk.bf16.mxu0 %vm423_vm0, %v404_v20  ;;  %1528 = vmatprep.subr.bf16.mxu1 %v1644_v31  ;;  %p1663_p12 = scmp.ne.s32.totalorder %s2112_s30, %s1662_s17  ;;  %s1668_s28 = scalar_lea.vmem %s1667_s27, 512 }
  0x26   : > { %810 = vperm.xlu1 %1634, %v395_v23   ;;  %795 = vperm.xlu0 %1633, %v392_v16   ;;  %p1669_p1 = scmp.lt.s32.totalorder %s2112_s30, %s1667_s27  ;;  %p1670_p2 = scmp.lt.s32.totalorder %s1668_s28, %s1662_s17 }
  0x27   : > { %p1664_p13 = pnand %p1663_p12, %p1826_p5 }
  0x28   : > { %1529 = vmatpush3.bf16.msra.mxu1 %v1644_v31  ;;  %v1728_v31 = vmov 0.0   ;;  %p1671_p3 = por %p1670_p2, %p1669_p1 }
  0x29   : > { %1530 = vmatprep.subr.bf16.mxu1 %v1645_v32  ;;  %1548 = vmatprep.subr.bf16.mxu0 %v1728_v31  ;;  %p1665_p0 = pneg %p1664_p13 }
  0x2a   : > { %815 = vperm.xlu1 %1634, %v396_v24   ;;  %775 = vperm.xlu0 %1633, %v388_v9  }
  0x2b   : > { %p1672_p4 = pnand %p1671_p3, %p1665_p0 }
  0x2c   : > { %1509 = vmatmul.mubr.msk.bf16.gmra.mrb[8].mxu0 %vm423_vm0, %v405_v26  ;;  %1531 = vmatpush3.bf16.msra.mxu1 %v1645_v32  ;;  %v1647_v32 = vld [vmem:[%s2166_s6 + $0x8] sm:$0xff]  }
  0x2d   : > { %1512 = vmatprep.mubr.msk.bf16.mxu0 %vm423_vm0, %v406_v27  ;;  %1568 = vmatprep.subr.bf16.mxu1 %v1728_v31 }
  0x2e   : > { %820 = vperm.xlu1 %1634, %v397_v25   ;;  %780 = vperm.xlu0 %1633, %v389_v10  }
  0x32   : > { %825 = vperm.xlu1 %1634, %v398_v28   ;;  %785 = vperm.xlu0 %1633, %v390_v14  }
  0x34   : > { %1513 = vmatmul.mubr.msk.bf16.gmra.mrb[12].mxu0 %vm423_vm0, %v407_v30  ;;  %v1646_v30 = vld [vmem:[%s2166_s6] sm:$0xff]  }
  0x35   : > { %1549 = vmatpush3.bf16.msra.mxu0 %v1646_v30  ;;  %1564 = vmatprep.mubr.msk.bf16.mxu0 %vm1729_vm1, %v1728_v31 }
  0x36   : > { %830 = vperm.xlu1 %1634, %v399_v29   ;;  %790 = vperm.xlu0 %1633, %v391_v15  }
  0x37   : > { %1550 = vmatprep.subr.bf16.mxu0 %v1728_v31 }
  0x39   : > { %1551 = vmatpush3.bf16.msra.mxu0 %v1647_v32 }
  0x3a   : > { %1635 = vset.pattern.permute.xlu0 %v1727_v36  ;;  %1636 = vset.pattern.permute.xlu1 %v1727_v36  ;;  %v1651_v36 = vld [vmem:[%s2166_s6 + $0x28] sm:$0xff]  }
  0x3b   : > { %949 = vperm.xlu0 %1635, %v945_v34   ;;  %953 = vperm.xlu1 %1636, %v946_v35   ;;  %v1649_v34 = vld [vmem:[%s2166_s6 + $0x18] sm:$0xff]   ;;  %v1650_v35 = vld [vmem:[%s2166_s6 + $0x20] sm:$0xff]  }
  0x3c   : > { %1552 = vmatprep.subr.bf16.mxu0 %v1728_v31 }
  0x3d   : > { %1553 = vmatpush3.bf16.msra.mxu0 %v1648_v33 }
  0x3e   : > { %1554 = vmatprep.subr.bf16.mxu0 %v1728_v31 }
  0x41   : > { %1555 = vmatpush3.bf16.msra.mxu0 %v1649_v34 }
  0x42   : > { %1556 = vmatprep.subr.bf16.mxu0 %v1728_v31 }
  0x45   : > { %1557 = vmatpush3.bf16.msra.mxu0 %v1650_v35 }
  0x46   : > { %1558 = vmatprep.subr.bf16.mxu0 %v1728_v31 }
  0x49   : > { %1559 = vmatpush3.bf16.msra.mxu0 %v1651_v36 }
  0x4a   : > { %1560 = vmatprep.subr.bf16.mxu0 %v1728_v31 }
  0xef   : > { %v1502_v38 = vpop.f32.mrb[0].mxu0 }
  0xf0   : > { %v491_v39 = vadd.f32 %v1502_v38, %v1412_v37  ;;  %v482_v40 = vpop.f32.mrb[1].mxu0  ;;  %v1653_v38 = vld [vmem:[%s2166_s6 + $0x38] sm:$0xff]  }
  0xf1   : > { %v483_v41 = vadd.f32 %v1412_v37, %v482_v40  ;;  %v1503_v42 = vpop.f32.mrb[2].mxu0  ;;  %v1655_v40 = vld [vmem:[%s2168_s8 + $0x8] sm:$0xff]  }
  0xf2   : > { %v494_v43 = vadd.f32 %v1503_v42, %v1412_v37  ;;  %v485_v44 = vpop.f32.mrb[3].mxu0  ;;  %v547_v46 = vmax.f32 %v491_v39, 0.0  ;;  %v1654_v39 = vld [vmem:[%s2168_s8] sm:$0xff]   ;;  %v1657_v42 = vld [vmem:[%s2168_s8 + $0x18] sm:$0xff]  }
  0xf3   : > { %v486_v45 = vadd.f32 %v1412_v37, %v485_v44  ;;  %v545_v48 = vmax.f32 %v483_v41, 0.0  ;;  %v1656_v41 = vld [vmem:[%s2168_s8 + $0x10] sm:$0xff]   ;;  %v761_v44 = vpop.permute.xlu0 %760 }
  0xf4   : > { %v548_v47 = vmax.f32 %v494_v43, 0.0  ;;  %v1658_v43 = vld [vmem:[%s2168_s8 + $0x20] sm:$0xff]  }
  0xf5   : > { %v546_v49 = vmax.f32 %v486_v45, 0.0  ;;  %v766_v45 = vpop.permute.xlu1 %765 }
  0xf6   : > { %v562_v50 = vpack.c.bf16 %v548_v47, %v547_v46  ;;  %v1659_v46 = vld [vmem:[%s2168_s8 + $0x28] sm:$0xff]  }
  0xf7   : > { %v1506_v51 = vpop.f32.mrb[4].mxu0  ;;  %v561_v52 = vpack.c.bf16 %v546_v49, %v545_v48  ;;  %v1958_v47 = vpop.permute.xlu0 %800 }
  0xf8   : > { %v507_v53 = vadd.f32 %v1506_v51, %v1412_v37  ;;  %v498_v54 = vpop.f32.mrb[5].mxu0 }
  0xf9   : > { %v499_v55 = vadd.f32 %v1412_v37, %v498_v54  ;;  %v1507_v56 = vpop.f32.mrb[6].mxu0  ;;  %1532 = vmatprep.mubr.bf16.mxu1 %v561_v52  ;;  %v1961_v48 = vpop.permute.xlu1 %805 }
  0xfa   : > { %v510_v57 = vadd.f32 %v1507_v56, %v1412_v37  ;;  %v501_v58 = vpop.f32.mrb[7].mxu0  ;;  %1533 = vmatmul.mubr.bf16.vlgmr.msra.gmra.mrb[0].mxu1 %v562_v50  ;;  %v551_v60 = vmax.f32 %v507_v53, 0.0 }
  0xfb   : > { %v502_v59 = vadd.f32 %v1412_v37, %v501_v58  ;;  %v549_v62 = vmax.f32 %v499_v55, 0.0  ;;  %1569 = vmatpush3.bf16.msra.mxu1 %v1654_v39  ;;  %v756_v49 = vpop.permute.xlu0 %755 }
  0xfc   : > { %v552_v61 = vmax.f32 %v510_v57, 0.0  ;;  %1570 = vmatprep.subr.bf16.mxu1 %v1728_v31 }
  0xfd   : > { %v550_v63 = vmax.f32 %v502_v59, 0.0  ;;  %v771_v50 = vpop.permute.xlu1 %770  ;;  %v1980_v59 = vld [vmem:[%s2165_s5] ss:$0 sm:$0xff] }
  0xfe   : > { %v564_v0 = vpack.c.bf16 %v552_v61, %v551_v60 }
  0xff   : > { %v563_v1 = vpack.c.bf16 %v550_v63, %v549_v62  ;;  %v1510_v2 = vpop.f32.mrb[8].mxu0  ;;  %1571 = vmatpush3.bf16.msra.mxu1 %v1655_v40  ;;  %v1963_v51 = vpop.permute.xlu0 %795 }
 0x100   : > { %v523_v3 = vadd.f32 %v1510_v2, %v1412_v37  ;;  %v514_v4 = vpop.f32.mrb[9].mxu0  ;;  %1572 = vmatprep.subr.bf16.mxu1 %v1728_v31 }
 0x101   : > { %v515_v5 = vadd.f32 %v1412_v37, %v514_v4  ;;  %v1511_v6 = vpop.f32.mrb[10].mxu0  ;;  %1536 = vmatprep.mubr.bf16.mxu1 %v563_v1  ;;  %v1965_v52 = vpop.permute.xlu1 %810 }
 0x102   : > { %v526_v7 = vadd.f32 %v1511_v6, %v1412_v37  ;;  %v517_v8 = vpop.f32.mrb[11].mxu0  ;;  %1537 = vmatmul.mubr.bf16.gmra.mrb[4].mxu1 %v564_v0  ;;  %v555_v10 = vmax.f32 %v523_v3, 0.0 }
 0x103   : > { %v518_v9 = vadd.f32 %v1412_v37, %v517_v8  ;;  %v553_v12 = vmax.f32 %v515_v5, 0.0  ;;  %1573 = vmatpush3.bf16.msra.mxu1 %v1656_v41  ;;  %v1967_v53 = vpop.permute.xlu0 %775 }
 0x104   : > { %v556_v11 = vmax.f32 %v526_v7, 0.0  ;;  %1574 = vmatprep.subr.bf16.mxu1 %v1728_v31 }
 0x105   : > { %v554_v13 = vmax.f32 %v518_v9, 0.0  ;;  %v1969_v54 = vpop.permute.xlu1 %815 }
 0x106   : > { %v566_v14 = vpack.c.bf16 %v556_v11, %v555_v10 }
 0x107   : > { %v565_v15 = vpack.c.bf16 %v554_v13, %v553_v12  ;;  %v1514_v16 = vpop.f32.mrb[12].mxu0  ;;  %1575 = vmatpush3.bf16.msra.mxu1 %v1657_v42  ;;  %v1971_v55 = vpop.permute.xlu0 %780 }
 0x108   : > { %v539_v17 = vadd.f32 %v1514_v16, %v1412_v37  ;;  %v530_v18 = vpop.f32.mrb[13].mxu0  ;;  %1576 = vmatprep.subr.bf16.mxu1 %v1728_v31 }
 0x109   : > { %v531_v19 = vadd.f32 %v1412_v37, %v530_v18  ;;  %v1515_v20 = vpop.f32.mrb[14].mxu0  ;;  %1540 = vmatprep.mubr.bf16.mxu1 %v565_v15  ;;  %v1973_v56 = vpop.permute.xlu1 %820 }
 0x10a   : > { %v542_v21 = vadd.f32 %v1515_v20, %v1412_v37  ;;  %v533_v22 = vpop.f32.mrb[15].mxu0  ;;  %1541 = vmatmul.mubr.bf16.gmra.mrb[8].mxu1 %v566_v14  ;;  %v559_v24 = vmax.f32 %v539_v17, 0.0 }
 0x10b   : > { %v534_v23 = vadd.f32 %v1412_v37, %v533_v22  ;;  %v557_v26 = vmax.f32 %v531_v19, 0.0  ;;  %v1652_v37 = vld [vmem:[%s2166_s6 + $0x30] sm:$0xff]   ;;  %1577 = vmatpush3.bf16.msra.mxu1 %v1658_v43  ;;  %v786_v57 = vpop.permute.xlu0 %785 }
 0x10c   : > { %v560_v25 = vmax.f32 %v542_v21, 0.0  ;;  %1561 = vmatpush3.bf16.msra.mxu0 %v1652_v37  ;;  %1578 = vmatprep.subr.bf16.mxu1 %v1728_v31 }
 0x10d   : > { %v558_v27 = vmax.f32 %v534_v23, 0.0  ;;  %1562 = vmatprep.subr.bf16.mxu0 %v1728_v31  ;;  %v1975_v58 = vpop.permute.xlu1 %825 }
 0x10e   : > { %v568_v28 = vpack.c.bf16 %v560_v25, %v559_v24 }
 0x10f   : > { %v567_v29 = vpack.c.bf16 %v558_v27, %v557_v26  ;;  %1579 = vmatpush3.bf16.msra.mxu1 %v1659_v46  ;;  %v791_v60 = vpop.permute.xlu0 %790 }
 0x110   : > { %1563 = vmatpush3.bf16.msra.mxu0 %v1653_v38  ;;  %1580 = vmatprep.subr.bf16.mxu1 %v1728_v31 }
 0x111   : > { %1544 = vmatprep.mubr.bf16.mxu1 %v567_v29  ;;  %v1983_v0 = vpop.permute.xlu1 %830 }
 0x112   : > { %1545 = vmatmul.mubr.bf16.gmra.mrb[12].mxu1 %v568_v28 }
 0x113   : > { %1584 = vmatprep.mubr.msk.bf16.mxu1 %vm1729_vm1, %v1728_v31  ;;  %v1986_v3 = vpop.permute.xlu0 %949 }
 0x114   : > { %v956_v11 = vrot.slane %v1986_v3, 2  ;;  %v957_v12 = vrot.slane %v1986_v3, 3  ;;  %v955_v16 = vrot.slane %v1986_v3, 1  ;;  %v960_v17 = vrot.slane %v1986_v3, 6 }
 0x115   : > { %v1992_v13 = vpop.permute.xlu1 %953  ;;  %v958_v20 = vrot.slane %v1986_v3, 4  ;;  %v961_v21 = vrot.slane %v1986_v3, 7  ;;  %v959_v25 = vrot.slane %v1986_v3, 5 }
 0x116   : > { %v963_v26 = vrot.slane %v1992_v13, 2  ;;  %v964_v32 = vrot.slane %v1992_v13, 3  ;;  %v962_v37 = vrot.slane %v1992_v13, 1 }
 0x1cd   : > { %v1534_v61 = vpop.f32.mrb[0].mxu1 }
 0x1ce   : > { %v683_v62 = vadd.f32 %v1534_v61, %v1980_v59  ;;  %v674_v63 = vpop.f32.mrb[1].mxu1 }
 0x1cf   : > { %v675_v1 = vadd.f32 %v1980_v59, %v674_v63  ;;  %v1535_v2 = vpop.f32.mrb[2].mxu1 }
 0x1d0   : > { %v739_v4 = vmax.f32 %v683_v62, 0.0  ;;  %v686_v5 = vadd.f32 %v1535_v2, %v1980_v59  ;;  %v677_v6 = vpop.f32.mrb[3].mxu1 }
 0x1d1   : > { %v737_v7 = vmax.f32 %v675_v1, 0.0  ;;  %v678_v8 = vadd.f32 %v1980_v59, %v677_v6 }
 0x1d2   : > { %v835_v9 = vmul.f32 %v766_v45, %v739_v4  ;;  %v740_v10 = vmax.f32 %v686_v5, 0.0 }
 0x1d3   : > { %v833_v14 = vmul.f32 %v756_v49, %v737_v7  ;;  %v738_v15 = vmax.f32 %v678_v8, 0.0 }
 0x1d4   : > { %v861_v18 = vrot.slane %v835_v9, 4  ;;  %v836_v19 = vmul.f32 %v771_v50, %v740_v10 }
 0x1d5   : > { %v849_v22 = vrot.slane %v833_v14, 4  ;;  %v834_v23 = vmul.f32 %v761_v44, %v738_v15  ;;  %v1538_v24 = vpop.f32.mrb[4].mxu1 }
 0x1d6   : > { %v862_v27 = vadd.f32 %v861_v18, %v835_v9  ;;  %v867_v28 = vrot.slane %v836_v19, 4  ;;  %v699_v29 = vadd.f32 %v1538_v24, %v1980_v59  ;;  %v690_v30 = vpop.f32.mrb[5].mxu1 }
 0x1d7   : > { %v850_v33 = vadd.f32 %v849_v22, %v833_v14  ;;  %v855_v34 = vrot.slane %v834_v23, 4  ;;  %v691_v35 = vadd.f32 %v1980_v59, %v690_v30  ;;  %v1539_v36 = vpop.f32.mrb[6].mxu1 }
 0x1d8   : > { %v863_v38 = vrot.slane %v862_v27, 2  ;;  %v868_v39 = vadd.f32 %v867_v28, %v836_v19  ;;  %v743_v40 = vmax.f32 %v699_v29, 0.0  ;;  %v702_v41 = vadd.f32 %v1539_v36, %v1980_v59  ;;  %v693_v42 = vpop.f32.mrb[7].mxu1 }
 0x1d9   : > { %v851_v43 = vrot.slane %v850_v33, 2  ;;  %v856_v44 = vadd.f32 %v855_v34, %v834_v23  ;;  %v741_v45 = vmax.f32 %v691_v35, 0.0  ;;  %v694_v46 = vadd.f32 %v1980_v59, %v693_v42 }
 0x1da   : > { %v864_v49 = vadd.f32 %v863_v38, %v862_v27  ;;  %v869_v50 = vrot.slane %v868_v39, 2  ;;  %v839_v61 = vmul.f32 %v786_v57, %v743_v40  ;;  %v744_v62 = vmax.f32 %v702_v41, 0.0 }
 0x1db   : > { %v852_v63 = vadd.f32 %v851_v43, %v850_v33  ;;  %v857_v1 = vrot.slane %v856_v44, 2  ;;  %v837_v2 = vmul.f32 %v1967_v53, %v741_v45  ;;  %v742_v4 = vmax.f32 %v694_v46, 0.0 }
 0x1dc   : > { %v865_v5 = vrot.slane %v864_v49, 1  ;;  %v870_v6 = vadd.f32 %v869_v50, %v868_v39  ;;  %v885_v7 = vrot.slane %v839_v61, 4  ;;  %v840_v8 = vmul.f32 %v791_v60, %v744_v62 }
 0x1dd   : > { %v853_v9 = vrot.slane %v852_v63, 1  ;;  %v858_v10 = vadd.f32 %v857_v1, %v856_v44  ;;  %v873_v14 = vrot.slane %v837_v2, 4  ;;  %v838_v15 = vmul.f32 %v1971_v55, %v742_v4  ;;  %v1542_v18 = vpop.f32.mrb[8].mxu1 }
 0x1de   : > { %v866_v19 = vadd.f32 %v865_v5, %v864_v49  ;;  %v871_v22 = vrot.slane %v870_v6, 1  ;;  %v886_v23 = vadd.f32 %v885_v7, %v839_v61  ;;  %v891_v57 = vrot.slane %v840_v8, 4  ;;  %v706_v24 = vpop.f32.mrb[9].mxu1 }
 0x1df   : > { %v854_v27 = vadd.f32 %v853_v9, %v852_v63  ;;  %v859_v28 = vrot.slane %v858_v10, 1  ;;  %v874_v29 = vadd.f32 %v873_v14, %v837_v2  ;;  %v879_v53 = vrot.slane %v838_v15, 4  ;;  %v1543_v30 = vpop.f32.mrb[10].mxu1 }
 0x1e0   : > { %v872_v33 = vadd.f32 %v871_v22, %v870_v6  ;;  %v887_v34 = vrot.slane %v886_v23, 2  ;;  %v892_v35 = vadd.f32 %v891_v57, %v840_v8  ;;  %v987_v60 = vmul.f32 %v956_v11, %v866_v19  ;;  %v709_v36 = vpop.f32.mrb[11].mxu1 }
 0x1e1   : > { %v860_v55 = vadd.f32 %v859_v28, %v858_v10  ;;  %v875_v38 = vrot.slane %v874_v29, 2  ;;  %v880_v39 = vadd.f32 %v879_v53, %v838_v15  ;;  %v985_v40 = vmul.f32 %v1986_v3, %v854_v27 }
 0x1e2   : > { %v888_v41 = vadd.f32 %v887_v34, %v886_v23  ;;  %v893_v42 = vrot.slane %v892_v35, 2  ;;  %v988_v43 = vmul.f32 %v957_v12, %v872_v33  ;;  %v1003_v44 = vpack.c.bf16 %v987_v60, %v987_v60 }
 0x1e3   : > { %v876_v45 = vadd.f32 %v875_v38, %v874_v29  ;;  %v881_v46 = vrot.slane %v880_v39, 2  ;;  %v986_v49 = vmul.f32 %v955_v16, %v860_v55  ;;  %v1001_v50 = vpack.c.bf16 %v985_v40, %v985_v40 }
 0x1e4   : > { %v889_v11 = vrot.slane %v888_v41, 1  ;;  %v894_v61 = vadd.f32 %v893_v42, %v892_v35  ;;  %v1004_v62 = vpack.c.bf16 %v988_v43, %v988_v43  ;;  %v965_v63 = vrot.slane %v1992_v13, 4 }
 0x1e5   : > { %v877_v1 = vrot.slane %v876_v45, 1  ;;  %v882_v2 = vadd.f32 %v881_v46, %v880_v39  ;;  %v1002_v4 = vpack.c.bf16 %v986_v49, %v986_v49  ;;  %v1546_v5 = vpop.f32.mrb[12].mxu1  ;;  %v966_v6 = vrot.slane %v1992_v13, 5 }
 0x1e6   : > { %v890_v7 = vadd.f32 %v889_v11, %v888_v41  ;;  %v895_v12 = vrot.slane %v894_v61, 1  ;;  %v1056_v8 = vunpack.c.l.b16 %v1001_v50  ;;  %v1058_v9 = vunpack.c.l.b16 %v1003_v44  ;;  %v722_v10 = vpop.f32.mrb[13].mxu1 }
 0x1e7   : > { %v878_v14 = vadd.f32 %v877_v1, %v876_v45  ;;  %v883_v15 = vrot.slane %v882_v2, 1  ;;  %v1057_v16 = vunpack.c.l.b16 %v1002_v4  ;;  %v715_v19 = vadd.f32 %v1542_v18, %v1980_v59  ;;  %v1547_v22 = vpop.f32.mrb[14].mxu1 }
 0x1e8   : > { %v896_v23 = vadd.f32 %v895_v12, %v894_v61  ;;  %v991_v57 = vmul.f32 %v960_v17, %v890_v7  ;;  %v2020_v27 = vunpack.c.l.b16 %v1004_v62  ;;  %v707_v28 = vadd.f32 %v1980_v59, %v706_v24  ;;  %v725_v29 = vpop.f32.mrb[15].mxu1 }
 0x1e9   : > { %v884_v53 = vadd.f32 %v883_v15, %v882_v2  ;;  %v989_v33 = vmul.f32 %v958_v20, %v878_v14  ;;  %v1072_v34 = vrot.slane %v1057_v16, 7  ;;  %v747_v35 = vmax.f32 %v715_v19, 0.0 }
 0x1ea   : > { %v2027_v60 = vmul.f32 %v961_v21, %v896_v23  ;;  %v1075_v18 = vrot.slane %v1058_v9, 6  ;;  %v745_v55 = vmax.f32 %v707_v28, 0.0  ;;  %v718_v38 = vadd.f32 %v1543_v30, %v1980_v59 }
 0x1eb   : > { %v2032_v17 = vmul.f32 %v959_v25, %v884_v53  ;;  %v1007_v24 = vpack.c.bf16 %v991_v57, %v991_v57  ;;  %v1074_v39 = vsel %vm1073_vm2, %v1072_v34, %v1056_v8  ;;  %v843_v40 = vmul.f32 %v1961_v48, %v747_v35 }
 0x1ec   : > { %v2037_v20 = vsel %vm1076_vm3, %v1075_v18, %v1074_v39  ;;  %v841_v41 = vmul.f32 %v1963_v51, %v745_v55  ;;  %v967_v21 = vrot.slane %v1992_v13, 6  ;;  %v968_v42 = vrot.slane %v1992_v13, 7 }
 0x1ed   : > { %v1005_v43 = vpack.c.bf16 %v989_v33, %v989_v33  ;;  %v1078_v30 = vrot.slane %v2020_v27, 5  ;;  %v909_v3 = vrot.slane %v843_v40, 4  ;;  %v748_v25 = vmax.f32 %v718_v38, 0.0 }
 0x1ee   : > { %v1008_v44 = vpack.c.bf16 %v2027_v60, %v2027_v60  ;;  %v897_v45 = vrot.slane %v841_v41, 4  ;;  %v710_v48 = vadd.f32 %v1980_v59, %v709_v36  ;;  %v731_v46 = vadd.f32 %v1546_v5, %v1980_v59 }
 0x1ef   : > { %v1006_v51 = vpack.c.bf16 %v2032_v17, %v2032_v17  ;;  %v2049_v49 = vunpack.c.l.b16 %v1007_v24  ;;  %v910_v50 = vadd.f32 %v909_v3, %v843_v40  ;;  %v844_v11 = vmul.f32 %v1965_v52, %v748_v25 }
 0x1f0   : > { %v898_v61 = vadd.f32 %v897_v45, %v841_v41  ;;  %v746_v62 = vmax.f32 %v710_v48, 0.0  ;;  %v751_v1 = vmax.f32 %v731_v46, 0.0  ;;  %v723_v2 = vadd.f32 %v1980_v59, %v722_v10 }
 0x1f1   : > { %v2053_v4 = vunpack.c.l.b16 %v1005_v43  ;;  %v911_v7 = vrot.slane %v910_v50, 2  ;;  %v915_v12 = vrot.slane %v844_v11, 4  ;;  %v734_v36 = vadd.f32 %v1547_v22, %v1980_v59 }
 0x1f2   : > { %v899_v5 = vrot.slane %v898_v61, 2  ;;  %v842_v8 = vmul.f32 %v1958_v47, %v746_v62  ;;  %v847_v9 = vmul.f32 %v1975_v58, %v751_v1  ;;  %v749_v14 = vmax.f32 %v723_v2, 0.0 }
 0x1f3   : > { %v912_v15 = vadd.f32 %v911_v7, %v910_v50  ;;  %v916_v16 = vadd.f32 %v915_v12, %v844_v11  ;;  %v752_v52 = vmax.f32 %v734_v36, 0.0  ;;  %v726_v19 = vadd.f32 %v1980_v59, %v725_v29 }
 0x1f4   : > { %v900_v23 = vadd.f32 %v899_v5, %v898_v61  ;;  %v903_v57 = vrot.slane %v842_v8, 4  ;;  %v933_v10 = vrot.slane %v847_v9, 4  ;;  %v845_v28 = vmul.f32 %v1969_v54, %v749_v14 }
 0x1f5   : > { %v913_v53 = vrot.slane %v912_v15, 1  ;;  %v917_v33 = vrot.slane %v916_v16, 2  ;;  %v848_v22 = vmul.f32 %v1983_v0, %v752_v52  ;;  %v750_v34 = vmax.f32 %v726_v19, 0.0 }
 0x1f6   : > { %v901_v35 = vrot.slane %v900_v23, 1  ;;  %v904_v47 = vadd.f32 %v903_v57, %v842_v8  ;;  %v934_v18 = vadd.f32 %v933_v10, %v847_v9  ;;  %v921_v58 = vrot.slane %v845_v28, 4 }
 0x1f7   : > { %v914_v55 = vadd.f32 %v913_v53, %v912_v15  ;;  %v918_v38 = vadd.f32 %v917_v33, %v916_v16  ;;  %v939_v17 = vrot.slane %v848_v22, 4  ;;  %v846_v59 = vmul.f32 %v1973_v56, %v750_v34 }
 0x1f8   : > { %v902_v29 = vadd.f32 %v901_v35, %v900_v23  ;;  %v905_v24 = vrot.slane %v904_v47, 2  ;;  %v935_v39 = vrot.slane %v934_v18, 2  ;;  %v922_v54 = vadd.f32 %v921_v58, %v845_v28 }
 0x1f9   : > { %v1087_v40 = vrot.slane %v2049_v49, 2  ;;  %v919_v0 = vrot.slane %v918_v38, 1  ;;  %v940_v41 = vadd.f32 %v939_v17, %v848_v22  ;;  %v927_v43 = vrot.slane %v846_v59, 4 }
 0x1fa   : > { %v906_v3 = vadd.f32 %v905_v24, %v904_v47  ;;  %v936_v25 = vadd.f32 %v935_v39, %v934_v18  ;;  %v923_v45 = vrot.slane %v922_v54, 2  ;;  %v995_v48 = vmul.f32 %v963_v26, %v914_v55 }
 0x1fb   : > { %v1061_v46 = vunpack.c.l.b16 %v1006_v51  ;;  %v920_v56 = vadd.f32 %v919_v0, %v918_v38  ;;  %v941_v50 = vrot.slane %v940_v41, 2  ;;  %v928_v11 = vadd.f32 %v927_v43, %v846_v59 }
 0x1fc   : > { %v907_v61 = vrot.slane %v906_v3, 1  ;;  %v937_v62 = vrot.slane %v936_v25, 1  ;;  %v924_v1 = vadd.f32 %v923_v45, %v922_v54  ;;  %v993_v2 = vmul.f32 %v1992_v13, %v902_v29 }
 0x1fd   : > { %v1081_v49 = vrot.slane %v2053_v4, 4  ;;  %v942_v7 = vadd.f32 %v941_v50, %v940_v41  ;;  %v929_v12 = vrot.slane %v928_v11, 2  ;;  %v996_v36 = vmul.f32 %v964_v32, %v920_v56  ;;  %v1660_v50 = vld [vmem:[%s2168_s8 + $0x30] sm:$0xff]  }
 0x1fe   : > { %v908_v5 = vadd.f32 %v907_v61, %v906_v3  ;;  %v938_v8 = vadd.f32 %v937_v62, %v936_v25  ;;  %v925_v26 = vrot.slane %v924_v1, 1  ;;  %v1011_v51 = vpack.c.bf16 %v995_v48, %v995_v48  ;;  %1581 = vmatpush3.bf16.msra.mxu1 %v1660_v50  ;;  %v1431_v61 = vld [vmem:[%s2167_s7] ss:$0 sm:$0xff] }
 0x1ff   : > { %v1084_v9 = vrot.slane %v1061_v46, 3  ;;  %v943_v14 = vrot.slane %v942_v7, 1  ;;  %v930_v15 = vadd.f32 %v929_v12, %v928_v11  ;;  %v1012_v16 = vpack.c.bf16 %v996_v36, %v996_v36  ;;  %1582 = vmatprep.subr.bf16.mxu1 %v1728_v31  ;;  %v1661_v11 = vld [vmem:[%s2168_s8 + $0x38] sm:$0xff]   ;;  %v1440_v31 = vld [vmem:[%s2169_s9] ss:$0 sm:$0xff] }
 0x200   : > { %v926_v52 = vadd.f32 %v925_v26, %v924_v1  ;;  %v994_v19 = vmul.f32 %v962_v37, %v908_v5  ;;  %v999_v4 = vmul.f32 %v967_v21, %v938_v8  ;;  %v1009_v23 = vpack.c.bf16 %v993_v2, %v993_v2 }
 0x201   : > { %v944_v57 = vadd.f32 %v943_v14, %v942_v7  ;;  %v931_v10 = vrot.slane %v930_v15, 1  ;;  %v1063_v32 = vunpack.c.l.b16 %v1008_v44  ;;  %v1080_v28 = vsel %vm1079_vm4, %v1078_v30, %v2037_v20 }
 0x202   : > { %v997_v53 = vmul.f32 %v965_v63, %v926_v52  ;;  %v1010_v33 = vpack.c.bf16 %v994_v19, %v994_v19  ;;  %v1066_v37 = vunpack.c.l.b16 %v1011_v51  ;;  %v1083_v22 = vsel %vm1082_vm5, %v1081_v49, %v1080_v28  ;;  %1583 = vmatpush3.bf16.msra.mxu1 %v1661_v11 }
 0x203   : > { %v932_v21 = vadd.f32 %v931_v10, %v930_v15  ;;  %v1000_v34 = vmul.f32 %v968_v42, %v944_v57  ;;  %v1067_v35 = vunpack.c.l.b16 %v1012_v16  ;;  %v1086_v60 = vsel %vm1085_vm6, %v1084_v9, %v1083_v22 }
 0x204   : > { %v1013_v44 = vpack.c.bf16 %v997_v53, %v997_v53  ;;  %v1015_v47 = vpack.c.bf16 %v999_v4, %v999_v4  ;;  %v1065_v18 = vunpack.c.l.b16 %v1010_v33  ;;  %v1089_v27 = vsel %vm1088_vm7, %v1087_v40, %v1086_v60 }
 0x205   : > { %v998_v20 = vmul.f32 %v966_v6, %v932_v21  ;;  %v1016_v63 = vpack.c.bf16 %v1000_v34, %v1000_v34  ;;  %v1090_v30 = vrot.slane %v1063_v32, 1  ;;  %v1064_v58 = vunpack.c.l.b16 %v1009_v23 }
 0x206   : > { %v1068_v55 = vunpack.c.l.b16 %v1013_v44  ;;  %v1093_v38 = vrot.slane %v1065_v18, 7  ;;  %v1095_v59 = vrot.slane %v1066_v37, 6  ;;  %v1070_v29 = vunpack.c.l.b16 %v1015_v47 }
 0x207   : > { %v1014_v17 = vpack.c.bf16 %v998_v20, %v998_v20  ;;  %v1092_v42 = vsel %vm1091_vm8, %v1090_v30, %v1089_v27  ;;  %v1097_v39 = vrot.slane %v1067_v35, 5  ;;  %v1071_v41 = vunpack.c.l.b16 %v1016_v63 }
 0x208   : > { %v1094_v24 = vsel %vm1073_vm2, %v1093_v38, %v1064_v58  ;;  %v1099_v54 = vrot.slane %v1068_v55, 4  ;;  %v1103_v3 = vrot.slane %v1070_v29, 2 }
 0x209   : > { %v1069_v0 = vunpack.c.l.b16 %v1014_v17  ;;  %v1096_v40 = vsel %vm1076_vm3, %v1095_v59, %v1094_v24  ;;  %v1105_v45 = vrot.slane %v1071_v41, 1 }
 0x20a   : > { %v1098_v13 = vsel %vm1079_vm4, %v1097_v39, %v1096_v40 }
 0x20b   : > { %v1101_v6 = vrot.slane %v1069_v0, 3  ;;  %v1100_v43 = vsel %vm1082_vm5, %v1099_v54, %v1098_v13 }
 0x20d   : > { %v1102_v25 = vsel %vm1085_vm6, %v1101_v6, %v1100_v43 }
 0x20e   : > { %v1104_v48 = vsel %vm1088_vm7, %v1103_v3, %v1102_v25 }
 0x20f   : > { %v1106_v46 = vsel %vm1091_vm8, %v1105_v45, %v1104_v48 }
 0x210   : > { %v1107_v56 = vpack.c.b16 %v1106_v46, %v1092_v42 }
 0x212   : > { %1565 = vmatmul.mubr.bf16.vlgmr.msra.gmra.mrb[16].mxu0 %v1107_v56 }
 0x2e5   : > { %v1191_v62 = vpop.f32.mrb[16].mxu0 }
 0x2e6   : > { %v1192_v1 = vadd.f32 %v1431_v61, %v1191_v62  ;;  %v1566_v2 = vpop.f32.mrb[17].mxu0 }
 0x2e7   : > { %v1194_v49 = vpop.f32.mrb[18].mxu0 }
 0x2e8   : > { %v1195_v7 = vadd.f32 %v1431_v61, %v1194_v49  ;;  %v1567_v12 = vpop.f32.mrb[19].mxu0  ;;  %v1198_v36 = vmax.f32 %v1192_v1, 0.0 }
 0x2ea   : > { %v1199_v5 = vmax.f32 %v1195_v7, 0.0 }
 0x2ec   : > { %v1200_v8 = vpack.c.bf16 %v1199_v5, %v1198_v36 }
 0x2ee   : > { %1585 = vmatmul.mubr.bf16.vlgmr.msra.gmra.mrb[16].mxu1 %v1200_v8 }
 0x3c1   : > { %v1306_v26 = vpop.f32.mrb[16].mxu1 }
 0x3c2   : > { %v1307_v51 = vadd.f32 %v1440_v31, %v1306_v26  ;;  %v1586_v9 = vpop.f32.mrb[17].mxu1 }
 0x3c3   : > { %v1309_v14 = vpop.f32.mrb[18].mxu1 }
 0x3c4   : > { %1313 = vst [vmem:[%s369_s29] sm:$0xff] %v1307_v51  ;;  %v1310_v15 = vadd.f32 %v1440_v31, %v1309_v14  ;;  %v1587_v16 = vpop.f32.mrb[19].mxu1 }
 0x3c6   : > { %1314 = vst [vmem:[%s369_s29 + $0x8] sm:$0xff] %v1310_v15 }
 0x3c7   : > { %1675 = shalt.err (!%p1672_p4)
}
 0x3c8   : > { %s1676_s26 = scalar_lea.hbm %s2117_s20, 256  ;;  %s1680_s12 = scalar_lea.hbm %s2170_s10, 512 }
 0x3c9   : > { %p1677_p7 = scmp.ne.s32.totalorder %s2117_s20, %s1676_s26  ;;  %p1681_p10 = scmp.lt.u32.totalorder %s2117_s20, %s2170_s10 }
 0x3ca   : > { %p1682_p11 = scmp.lt.u32.totalorder %s1680_s12, %s1676_s26  ;;  %p1684_p13 = scmp.lt.u32.totalorder %s1676_s26, %s2117_s20 }
 0x3cb   : > { %p1678_p8 = pnand %p1677_p7, %p1826_p5 }
 0x3cc   : > { %p1683_p12 = por %p1682_p11, %p1681_p10 }
 0x3cd   : > { %p1679_p9 = pneg %p1678_p8 }
 0x3ce   : > { %p1685_p0 = por %p1684_p13, %p1683_p12 }
 0x3d0   : > { %p1686_p1 = pnand %p1685_p0, %p1679_p9 }
 0x3d2   : > { %1689 = shalt.err (!%p1686_p1)
}
 0x3d3   : > { %s1731_s17 = smov 128   ;;  %s1732_s27 = smov 8  }
 0x3d4   : > { %1588 = dma.vmem_to_hbm [thread:$0]  (%p1826_p5), %s2112_s30, 256, %s2117_s20, %s2119_s25, %s1731_s17, %s1731_s17, %s1732_s27  }
 0x3d5 PF: > { %p1594_p2 = scmp.ge.s32.totalorder %s1724_s16, 2  ;;  %s1344_s28 = sand.u32 1, %s1712_s13  }
 0x3d6   : > { %s1345_s26 = scalar_lea.sflag [#allocation3], %s1344_s28 }
 0x3d7   : > { %p1591_p3 = pnand %p1594_p2, %p1830_p6 }
 0x3d9   : > { %1707 = dma.done.wait (!%p1591_p3), %s1345_s26, 256  }
 0x3da   : > { %1709 = vsyncadd (!%p1591_p3), %s1345_s26, 4294967040  ;;  %p20_p4 = scmp.ge.s32.totalorder %s1813_s19, 4   ;;  %s2173_s13 = smov %s1716_s14 }
 0x3db   : > { %s2174_s14 = smov %s1720_s15  ;;  %s2175_s15 = smov %s1824_s22 }
 0x3dc   : > { %s2176_s16 = smov %s1813_s19  ;;  %22 = sbr.rel (!%p20_p4) target bundleno = 3 (0x3), region = 98 }
 0x3e3   :  { %1350 = vsyncpa [#allocation3], 1 }
 0x3e4   :  { %1352 = vsyncpa [#allocation3 + $0x1], 1 }

// kernel: tpu_custom_call.1
= control target key start
LH: loop header
LB: loop body
LE: loop exit
PB: predicated region body
PF: predicated region fallthrough
CT: control target
= control target key end

     0   :  { %15 = vsyncpa [#allocation3], 0  ;;  %s2160_s0 = inlined_call_operand.vmem [shape: f32[256,17], index: 0, kind: input, shape index: {}]   ;;  %s2161_s1 = inlined_call_operand.vmem [shape: f32[32,1], index: 1, kind: input, shape index: {}]   ;;  %s2162_s2 = inlined_call_operand.vmem [shape: bf16[16,128], index: 2, kind: input, shape index: {}]   ;;  %s2163_s3 = inlined_call_operand.vmem [shape: f32[1,128], index: 3, kind: input, shape index: {}]   ;;  %s2164_s4 = inlined_call_operand.vmem [shape: bf16[128,128], index: 4, kind: input, shape index: {}]   ;;  %s2165_s5 = inlined_call_operand.vmem [shape: f32[1,128], index: 5, kind: input, shape index: {}]   ;;  %s2166_s6 = inlined_call_operand.vmem [shape: bf16[128,128], index: 6, kind: input, shape index: {}]   ;;  %s2167_s7 = inlined_call_operand.vmem [shape: f32[1,128], index: 7, kind: input, shape index: {}]   ;;  %s2168_s8 = inlined_call_operand.vmem [shape: bf16[128,128], index: 8, kind: input, shape index: {}]   ;;  %s2169_s9 = inlined_call_operand.vmem [shape: f32[1,128], index: 9, kind: input, shape index: {}]   ;;  %s2170_s10 = inlined_call_operand.hbm [shape: f32[32,128], index: 10, kind: output, shape index: {}]  }
   0x1   :  { %17 = vsyncpa [#allocation3 + $0x1], 0  ;;  %s1788_s13 = smov 0   ;;  %s1790_s14 = smov 0  }
   0x2   :  { %s1792_s15 = smov 0   ;;  %s1794_s16 = smov 0  }
   0x3 LB: > { %s1809_s17 = sadd.s32 4294967295, %s1724_s16   ;;  %s1403_s18 = sadd.s32 4294967294, %s1724_s16   ;;  %s1724_s16 = sphi %s1794_s16, %s2176_s16   ;;  %s1720_s15 = sphi %s1792_s15, %s2175_s15   ;;  %s1716_s14 = sphi %s1790_s14, %s2174_s14   ;;  %s1712_s13 = sphi %s1788_s13, %s2173_s13  }
   0x4   : > { %s1813_s19 = sadd.s32 1, %s1724_s16   ;;  %s250_s20 = sadd.s32 1, %s1720_s15 }
   0x5   : > { %s247_s21 = ssub.s32 %s1724_s16, %s1813_s19  ;;  %p260_p0 = scmp.ne.s32.totalorder %s1720_s15, %s1716_s14 }
   0x6   : > { %p248_p1 = scmp.eq.s32.totalorder %s247_s21, 0  ;;  %p261_p2 = scmp.eq.s32.totalorder %s1809_s17, 1 }
   0x7   : > { %p266_p3 = scmp.ne.s32.totalorder %s1716_s14, %s1712_s13  ;;  %p267_p4 = scmp.eq.s32.totalorder %s1403_s18, 1 }
   0x8   : > { %s1824_s22 = scalar_select %p248_p1, %s1720_s15, %s250_s20  }
   0x9   : > { %p1826_p5 = por %p261_p2, %p260_p0  ;;  %p1830_p6 = por %p267_p4, %p266_p3 }
   0xa   : > { %p1406_p7 = scmp.ge.s32.totalorder %s1724_s16, 1  ;;  %p327_p8 = scmp.lt.s32.totalorder %s1724_s16, 3 }
   0xc   : > { %p328_p9 = pnand %p1406_p7, %p327_p8 }
   0xd   : > { %v1637_v0 = vld [vmem:[%s2162_s2] sm:$0xff] (!%p328_p9)   ;;  %s1408_s27 = sshll.u32 (!%p328_p9), %s1809_s17, 4  ;;  %v1639_v2 = vld [vmem:[%s2164_s4 + $0x8] sm:$0xff] (!%p328_p9)   ;;  %v1640_v3 = vld [vmem:[%s2164_s4 + $0x10] sm:$0xff] (!%p328_p9)   ;;  %vm423_vm0 = vcmask (!%p328_p9), 130048   ;;  %v1726_v33 = vmov (!%p328_p9), 16  }
   0xe   : > { %331 = sbr.rel (%p328_p9) target bundleno = 981 (0x3d5), region = 60  ;;  %p371_p10 = scmp.lt.s32.totalorder (!%p328_p9), %s1408_s27, 31  ;;  %1498 = vmatprep.subr.bf16.mxu0 (!%p328_p9), %v1637_v0  ;;  %v1638_v1 = vld [vmem:[%s2164_s4] sm:$0xff] (!%p328_p9)   ;;  %v1641_v13 = vld [vmem:[%s2164_s4 + $0x18] sm:$0xff] (!%p328_p9)   ;;  %v1643_v21 = vld [vmem:[%s2164_s4 + $0x28] sm:$0xff] (!%p328_p9)   ;;  %1634 = vset.pattern.permute.xlu1 (!%p328_p9), %v1726_v33  ;;  %v1727_v36 = vmov (!%p328_p9), 0  }
   0xf   : > { %1499 = vmatpush3.bf16.msra.mxu0 (!%p328_p9), %v1637_v0  ;;  %1516 = vmatprep.subr.bf16.mxu1 (!%p328_p9), %v1638_v1  ;;  %v1642_v18 = vld [vmem:[%s2164_s4 + $0x20] sm:$0xff] (!%p328_p9)   ;;  %v1644_v31 = vld [vmem:[%s2164_s4 + $0x30] sm:$0xff] (!%p328_p9)   ;;  %v1645_v32 = vld [vmem:[%s2164_s4 + $0x38] sm:$0xff] (!%p328_p9)   ;;  %vm1729_vm1 = vmmov (!%p328_p9), 0   ;;  %vm1073_vm2 = vcmask (!%p328_p9), 1041409   ;;  %vm1076_vm3 = vcmask (!%p328_p9), 1042434  }
  0x10   : > { %1517 = vmatpush3.bf16.msra.mxu1 (!%p328_p9), %v1638_v1  ;;  %1633 = vset.pattern.permute.xlu0 (!%p328_p9), %v1726_v33  ;;  %v1412_v37 = vld [vmem:[%s2163_s3] ss:$0 sm:$0xff] (!%p328_p9)  ;;  %v1648_v33 = vld [vmem:[%s2166_s6 + $0x10] sm:$0xff] (!%p328_p9)   ;;  %vm1079_vm4 = vcmask (!%p328_p9), 1043459   ;;  %vm1082_vm5 = vcmask (!%p328_p9), 1044484   ;;  %vm1085_vm6 = vcmask (!%p328_p9), 1045509  }
  0x11   : > { %1518 = vmatprep.subr.bf16.mxu1 (!%p328_p9), %v1639_v2  ;;  %vm1088_vm7 = vcmask (!%p328_p9), 1046534   ;;  %vm1091_vm8 = vcmask (!%p328_p9), 1047559   ;;  %s367_s26 = sand.u32 (!%p328_p9), 1, %s1716_s14   ;;  %s1454_s11 = sshll.u32 (!%p328_p9), %s1809_s17, 8 }
  0x12   : > { %s2117_s20 = scalar_lea.hbm (!%p328_p9), %s2170_s10, %s1454_s11  ;;  %s2119_s25 = scalar_lea.sflag (!%p328_p9), [#allocation3], %s367_s26 }
  0x14   : > { %1519 = vmatpush3.bf16.msra.mxu1 (!%p328_p9), %v1639_v2 }
  0x15   : > { %s2178_s27 = smov (!%p371_p10, %s1408_s27), 31  ;;  %1520 = vmatprep.subr.bf16.mxu1 %v1640_v3 }
  0x16   : > { %s1409_s12 = sshll.u32 %s2178_s27, 3 }
  0x17   : > { %s1849_s21 = scalar_lea.vmem %s2160_s0, %s1409_s12 }
  0x18   : > { %v384_v4 = vld [vmem:[%s1849_s21] sm:$0xff]  ;;  %v385_v5 = vld [vmem:[%s1849_s21 + $0x8] sm:$0xff]  ;;  %v386_v6 = vld [vmem:[%s1849_s21 + $0x10] sm:$0xff]  ;;  %1521 = vmatpush3.bf16.msra.mxu1 %v1640_v3 }
  0x19   : > { %v400_v7 = vpack.c.bf16 %v385_v5, %v384_v4  ;;  %v387_v8 = vld [vmem:[%s1849_s21 + $0x18] sm:$0xff]  ;;  %v388_v9 = vld [vmem:[%s1849_s21 + $0x20] sm:$0xff]  ;;  %v389_v10 = vld [vmem:[%s1849_s21 + $0x28] sm:$0xff]  ;;  %1522 = vmatprep.subr.bf16.mxu1 %v1641_v13  ;;  %765 = vperm.xlu1 %1634, %v386_v6  }
  0x1a   : > { %v401_v11 = vpack.c.bf16 %v387_v8, %v386_v6  ;;  %v402_v12 = vpack.c.bf16 %v389_v10, %v388_v9  ;;  %v390_v14 = vld [vmem:[%s1849_s21 + $0x30] sm:$0xff]  ;;  %v391_v15 = vld [vmem:[%s1849_s21 + $0x38] sm:$0xff]  ;;  %v392_v16 = vld [vmem:[%s1849_s21 + $0x40] sm:$0xff]  ;;  %760 = vperm.xlu0 %1633, %v385_v5  }
  0x1b   : > { %1500 = vmatprep.mubr.msk.bf16.mxu0 %vm423_vm0, %v400_v7  ;;  %v393_v17 = vld [vmem:[%s1849_s21 + $0x48] sm:$0xff]  ;;  %v403_v19 = vpack.c.bf16 %v391_v15, %v390_v14  ;;  %v394_v22 = vld [vmem:[%s1849_s21 + $0x50] sm:$0xff]  ;;  %v395_v23 = vld [vmem:[%s1849_s21 + $0x58] sm:$0xff] }
  0x1c   : > { %1501 = vmatmul.mubr.msk.bf16.vlgmr.msra.gmra.mrb[0].mxu0 %vm423_vm0, %v401_v11  ;;  %v404_v20 = vpack.c.bf16 %v393_v17, %v392_v16  ;;  %1523 = vmatpush3.bf16.msra.mxu1 %v1641_v13  ;;  %v396_v24 = vld [vmem:[%s1849_s21 + $0x60] sm:$0xff]  ;;  %v397_v25 = vld [vmem:[%s1849_s21 + $0x68] sm:$0xff]  ;;  %v405_v26 = vpack.c.bf16 %v395_v23, %v394_v22  ;;  %v398_v28 = vld [vmem:[%s1849_s21 + $0x70] sm:$0xff] }
  0x1d   : > { %1504 = vmatprep.mubr.msk.bf16.mxu0 %vm423_vm0, %v402_v12  ;;  %1524 = vmatprep.subr.bf16.mxu1 %v1642_v18  ;;  %v406_v27 = vpack.c.bf16 %v397_v25, %v396_v24  ;;  %v399_v29 = vld [vmem:[%s1849_s21 + $0x78] sm:$0xff]  ;;  %s1410_s21 = sshll.u32 %s1809_s17, 1 }
  0x1e   : > { %v407_v30 = vpack.c.bf16 %v399_v29, %v398_v28  ;;  %805 = vperm.xlu1 %1634, %v394_v22   ;;  %800 = vperm.xlu0 %1633, %v393_v17   ;;  %p377_p11 = scmp.lt.s32.totalorder %s1410_s21, 3 }
  0x20   : > { %1525 = vmatpush3.bf16.msra.mxu1 %v1642_v18  ;;  %s2180_s21 = smov (!%p377_p11, %s1410_s21), 3 }
  0x21   : > { %1526 = vmatprep.subr.bf16.mxu1 %v1643_v21  ;;  %s1411_s27 = sshll.u32 %s2180_s21, 3  ;;  %s1407_s21 = sshll.u32 %s367_s26, 4 }
  0x22   : > { %770 = vperm.xlu1 %1634, %v387_v8   ;;  %755 = vperm.xlu0 %1633, %v384_v4   ;;  %s380_s30 = scalar_lea.vmem %s2161_s1, %s1411_s27  ;;  %s369_s29 = scalar_lea.vmem [#allocation2], %s1407_s21 }
  0x23   : > { %v945_v34 = vld [vmem:[%s380_s30] sm:$0xff]  ;;  %v946_v35 = vld [vmem:[%s380_s30 + $0x8] sm:$0xff]  ;;  %s1329_s30 = sshll.u32 %s369_s29, 4  ;;  %s1730_s21 = smov [#allocation2]   ;;  %s2112_s30 = int_to_ptr.vmem [resolvable:$true] %s1329_s30 }
  0x24   : > { %1505 = vmatmul.mubr.msk.bf16.gmra.mrb[4].mxu0 %vm423_vm0, %v403_v19  ;;  %1527 = vmatpush3.bf16.msra.mxu1 %v1643_v21  ;;  %s1662_s17 = scalar_lea.vmem %s2112_s30, 256  ;;  %s1666_s27 = sshll.u32 %s1730_s21, 4  ;;  %s1667_s27 = int_to_ptr.vmem [resolvable:$false] %s1666_s27 }
  0x25   : > { %1508 = vmatprep.mubr.msk.bf16.mxu0 %vm423_vm0, %v404_v20  ;;  %1528 = vmatprep.subr.bf16.mxu1 %v1644_v31  ;;  %p1663_p12 = scmp.ne.s32.totalorder %s2112_s30, %s1662_s17  ;;  %s1668_s28 = scalar_lea.vmem %s1667_s27, 512 }
  0x26   : > { %810 = vperm.xlu1 %1634, %v395_v23   ;;  %795 = vperm.xlu0 %1633, %v392_v16   ;;  %p1669_p1 = scmp.lt.s32.totalorder %s2112_s30, %s1667_s27  ;;  %p1670_p2 = scmp.lt.s32.totalorder %s1668_s28, %s1662_s17 }
  0x27   : > { %p1664_p13 = pnand %p1663_p12, %p1826_p5 }
  0x28   : > { %1529 = vmatpush3.bf16.msra.mxu1 %v1644_v31  ;;  %v1728_v31 = vmov 0.0   ;;  %p1671_p3 = por %p1670_p2, %p1669_p1 }
  0x29   : > { %1530 = vmatprep.subr.bf16.mxu1 %v1645_v32  ;;  %1548 = vmatprep.subr.bf16.mxu0 %v1728_v31  ;;  %p1665_p0 = pneg %p1664_p13 }
  0x2a   : > { %815 = vperm.xlu1 %1634, %v396_v24   ;;  %775 = vperm.xlu0 %1633, %v388_v9  }
  0x2b   : > { %p1672_p4 = pnand %p1671_p3, %p1665_p0 }
  0x2c   : > { %1509 = vmatmul.mubr.msk.bf16.gmra.mrb[8].mxu0 %vm423_vm0, %v405_v26  ;;  %1531 = vmatpush3.bf16.msra.mxu1 %v1645_v32  ;;  %v1647_v32 = vld [vmem:[%s2166_s6 + $0x8] sm:$0xff]  }
  0x2d   : > { %1512 = vmatprep.mubr.msk.bf16.mxu0 %vm423_vm0, %v406_v27  ;;  %1568 = vmatprep.subr.bf16.mxu1 %v1728_v31 }
  0x2e   : > { %820 = vperm.xlu1 %1634, %v397_v25   ;;  %780 = vperm.xlu0 %1633, %v389_v10  }
  0x32   : > { %825 = vperm.xlu1 %1634, %v398_v28   ;;  %785 = vperm.xlu0 %1633, %v390_v14  }
  0x34   : > { %1513 = vmatmul.mubr.msk.bf16.gmra.mrb[12].mxu0 %vm423_vm0, %v407_v30  ;;  %v1646_v30 = vld [vmem:[%s2166_s6] sm:$0xff]  }
  0x35   : > { %1549 = vmatpush3.bf16.msra.mxu0 %v1646_v30  ;;  %1564 = vmatprep.mubr.msk.bf16.mxu0 %vm1729_vm1, %v1728_v31 }
  0x36   : > { %830 = vperm.xlu1 %1634, %v399_v29   ;;  %790 = vperm.xlu0 %1633, %v391_v15  }
  0x37   : > { %1550 = vmatprep.subr.bf16.mxu0 %v1728_v31 }
  0x39   : > { %1551 = vmatpush3.bf16.msra.mxu0 %v1647_v32 }
  0x3a   : > { %1635 = vset.pattern.permute.xlu0 %v1727_v36  ;;  %1636 = vset.pattern.permute.xlu1 %v1727_v36  ;;  %v1651_v36 = vld [vmem:[%s2166_s6 + $0x28] sm:$0xff]  }
  0x3b   : > { %949 = vperm.xlu0 %1635, %v945_v34   ;;  %953 = vperm.xlu1 %1636, %v946_v35   ;;  %v1649_v34 = vld [vmem:[%s2166_s6 + $0x18] sm:$0xff]   ;;  %v1650_v35 = vld [vmem:[%s2166_s6 + $0x20] sm:$0xff]  }
  0x3c   : > { %1552 = vmatprep.subr.bf16.mxu0 %v1728_v31 }
  0x3d   : > { %1553 = vmatpush3.bf16.msra.mxu0 %v1648_v33 }
  0x3e   : > { %1554 = vmatprep.subr.bf16.mxu0 %v1728_v31 }
  0x41   : > { %1555 = vmatpush3.bf16.msra.mxu0 %v1649_v34 }
  0x42   : > { %1556 = vmatprep.subr.bf16.mxu0 %v1728_v31 }
  0x45   : > { %1557 = vmatpush3.bf16.msra.mxu0 %v1650_v35 }
  0x46   : > { %1558 = vmatprep.subr.bf16.mxu0 %v1728_v31 }
  0x49   : > { %1559 = vmatpush3.bf16.msra.mxu0 %v1651_v36 }
  0x4a   : > { %1560 = vmatprep.subr.bf16.mxu0 %v1728_v31 }
  0xef   : > { %v1502_v38 = vpop.f32.mrb[0].mxu0 }
  0xf0   : > { %v491_v39 = vadd.f32 %v1502_v38, %v1412_v37  ;;  %v482_v40 = vpop.f32.mrb[1].mxu0  ;;  %v1653_v38 = vld [vmem:[%s2166_s6 + $0x38] sm:$0xff]  }
  0xf1   : > { %v483_v41 = vadd.f32 %v1412_v37, %v482_v40  ;;  %v1503_v42 = vpop.f32.mrb[2].mxu0  ;;  %v1655_v40 = vld [vmem:[%s2168_s8 + $0x8] sm:$0xff]  }
  0xf2   : > { %v494_v43 = vadd.f32 %v1503_v42, %v1412_v37  ;;  %v485_v44 = vpop.f32.mrb[3].mxu0  ;;  %v547_v46 = vmax.f32 %v491_v39, 0.0  ;;  %v1654_v39 = vld [vmem:[%s2168_s8] sm:$0xff]   ;;  %v1657_v42 = vld [vmem:[%s2168_s8 + $0x18] sm:$0xff]  }
  0xf3   : > { %v486_v45 = vadd.f32 %v1412_v37, %v485_v44  ;;  %v545_v48 = vmax.f32 %v483_v41, 0.0  ;;  %v1656_v41 = vld [vmem:[%s2168_s8 + $0x10] sm:$0xff]   ;;  %v761_v44 = vpop.permute.xlu0 %760 }
  0xf4   : > { %v548_v47 = vmax.f32 %v494_v43, 0.0  ;;  %v1658_v43 = vld [vmem:[%s2168_s8 + $0x20] sm:$0xff]  }
  0xf5   : > { %v546_v49 = vmax.f32 %v486_v45, 0.0  ;;  %v766_v45 = vpop.permute.xlu1 %765 }
  0xf6   : > { %v562_v50 = vpack.c.bf16 %v548_v47, %v547_v46  ;;  %v1659_v46 = vld [vmem:[%s2168_s8 + $0x28] sm:$0xff]  }
  0xf7   : > { %v1506_v51 = vpop.f32.mrb[4].mxu0  ;;  %v561_v52 = vpack.c.bf16 %v546_v49, %v545_v48  ;;  %v1958_v47 = vpop.permute.xlu0 %800 }
  0xf8   : > { %v507_v53 = vadd.f32 %v1506_v51, %v1412_v37  ;;  %v498_v54 = vpop.f32.mrb[5].mxu0 }
  0xf9   : > { %v499_v55 = vadd.f32 %v1412_v37, %v498_v54  ;;  %v1507_v56 = vpop.f32.mrb[6].mxu0  ;;  %1532 = vmatprep.mubr.bf16.mxu1 %v561_v52  ;;  %v1961_v48 = vpop.permute.xlu1 %805 }
  0xfa   : > { %v510_v57 = vadd.f32 %v1507_v56, %v1412_v37  ;;  %v501_v58 = vpop.f32.mrb[7].mxu0  ;;  %1533 = vmatmul.mubr.bf16.vlgmr.msra.gmra.mrb[0].mxu1 %v562_v50  ;;  %v551_v60 = vmax.f32 %v507_v53, 0.0 }
  0xfb   : > { %v502_v59 = vadd.f32 %v1412_v37, %v501_v58  ;;  %v549_v62 = vmax.f32 %v499_v55, 0.0  ;;  %1569 = vmatpush3.bf16.msra.mxu1 %v1654_v39  ;;  %v756_v49 = vpop.permute.xlu0 %755 }
  0xfc   : > { %v552_v61 = vmax.f32 %v510_v57, 0.0  ;;  %1570 = vmatprep.subr.bf16.mxu1 %v1728_v31 }
  0xfd   : > { %v550_v63 = vmax.f32 %v502_v59, 0.0  ;;  %v771_v50 = vpop.permute.xlu1 %770  ;;  %v1980_v59 = vld [vmem:[%s2165_s5] ss:$0 sm:$0xff] }
  0xfe   : > { %v564_v0 = vpack.c.bf16 %v552_v61, %v551_v60 }
  0xff   : > { %v563_v1 = vpack.c.bf16 %v550_v63, %v549_v62  ;;  %v1510_v2 = vpop.f32.mrb[8].mxu0  ;;  %1571 = vmatpush3.bf16.msra.mxu1 %v1655_v40  ;;  %v1963_v51 = vpop.permute.xlu0 %795 }
 0x100   : > { %v523_v3 = vadd.f32 %v1510_v2, %v1412_v37  ;;  %v514_v4 = vpop.f32.mrb[9].mxu0  ;;  %1572 = vmatprep.subr.bf16.mxu1 %v1728_v31 }
 0x101   : > { %v515_v5 = vadd.f32 %v1412_v37, %v514_v4  ;;  %v1511_v6 = vpop.f32.mrb[10].mxu0  ;;  %1536 = vmatprep.mubr.bf16.mxu1 %v563_v1  ;;  %v1965_v52 = vpop.permute.xlu1 %810 }
 0x102   : > { %v526_v7 = vadd.f32 %v1511_v6, %v1412_v37  ;;  %v517_v8 = vpop.f32.mrb[11].mxu0  ;;  %1537 = vmatmul.mubr.bf16.gmra.mrb[4].mxu1 %v564_v0  ;;  %v555_v10 = vmax.f32 %v523_v3, 0.0 }
 0x103   : > { %v518_v9 = vadd.f32 %v1412_v37, %v517_v8  ;;  %v553_v12 = vmax.f32 %v515_v5, 0.0  ;;  %1573 = vmatpush3.bf16.msra.mxu1 %v1656_v41  ;;  %v1967_v53 = vpop.permute.xlu0 %775 }
 0x104   : > { %v556_v11 = vmax.f32 %v526_v7, 0.0  ;;  %1574 = vmatprep.subr.bf16.mxu1 %v1728_v31 }
 0x105   : > { %v554_v13 = vmax.f32 %v518_v9, 0.0  ;;  %v1969_v54 = vpop.permute.xlu1 %815 }
 0x106   : > { %v566_v14 = vpack.c.bf16 %v556_v11, %v555_v10 }
 0x107   : > { %v565_v15 = vpack.c.bf16 %v554_v13, %v553_v12  ;;  %v1514_v16 = vpop.f32.mrb[12].mxu0  ;;  %1575 = vmatpush3.bf16.msra.mxu1 %v1657_v42  ;;  %v1971_v55 = vpop.permute.xlu0 %780 }
 0x108   : > { %v539_v17 = vadd.f32 %v1514_v16, %v1412_v37  ;;  %v530_v18 = vpop.f32.mrb[13].mxu0  ;;  %1576 = vmatprep.subr.bf16.mxu1 %v1728_v31 }
 0x109   : > { %v531_v19 = vadd.f32 %v1412_v37, %v530_v18  ;;  %v1515_v20 = vpop.f32.mrb[14].mxu0  ;;  %1540 = vmatprep.mubr.bf16.mxu1 %v565_v15  ;;  %v1973_v56 = vpop.permute.xlu1 %820 }
 0x10a   : > { %v542_v21 = vadd.f32 %v1515_v20, %v1412_v37  ;;  %v533_v22 = vpop.f32.mrb[15].mxu0  ;;  %1541 = vmatmul.mubr.bf16.gmra.mrb[8].mxu1 %v566_v14  ;;  %v559_v24 = vmax.f32 %v539_v17, 0.0 }
 0x10b   : > { %v534_v23 = vadd.f32 %v1412_v37, %v533_v22  ;;  %v557_v26 = vmax.f32 %v531_v19, 0.0  ;;  %v1652_v37 = vld [vmem:[%s2166_s6 + $0x30] sm:$0xff]   ;;  %1577 = vmatpush3.bf16.msra.mxu1 %v1658_v43  ;;  %v786_v57 = vpop.permute.xlu0 %785 }
 0x10c   : > { %v560_v25 = vmax.f32 %v542_v21, 0.0  ;;  %1561 = vmatpush3.bf16.msra.mxu0 %v1652_v37  ;;  %1578 = vmatprep.subr.bf16.mxu1 %v1728_v31 }
 0x10d   : > { %v558_v27 = vmax.f32 %v534_v23, 0.0  ;;  %1562 = vmatprep.subr.bf16.mxu0 %v1728_v31  ;;  %v1975_v58 = vpop.permute.xlu1 %825 }
 0x10e   : > { %v568_v28 = vpack.c.bf16 %v560_v25, %v559_v24 }
 0x10f   : > { %v567_v29 = vpack.c.bf16 %v558_v27, %v557_v26  ;;  %1579 = vmatpush3.bf16.msra.mxu1 %v1659_v46  ;;  %v791_v60 = vpop.permute.xlu0 %790 }
 0x110   : > { %1563 = vmatpush3.bf16.msra.mxu0 %v1653_v38  ;;  %1580 = vmatprep.subr.bf16.mxu1 %v1728_v31 }
 0x111   : > { %1544 = vmatprep.mubr.bf16.mxu1 %v567_v29  ;;  %v1983_v0 = vpop.permute.xlu1 %830 }
 0x112   : > { %1545 = vmatmul.mubr.bf16.gmra.mrb[12].mxu1 %v568_v28 }
 0x113   : > { %1584 = vmatprep.mubr.msk.bf16.mxu1 %vm1729_vm1, %v1728_v31  ;;  %v1986_v3 = vpop.permute.xlu0 %949 }
 0x114   : > { %v956_v11 = vrot.slane %v1986_v3, 2  ;;  %v957_v12 = vrot.slane %v1986_v3, 3  ;;  %v955_v16 = vrot.slane %v1986_v3, 1  ;;  %v960_v17 = vrot.slane %v1986_v3, 6 }
 0x115   : > { %v1992_v13 = vpop.permute.xlu1 %953  ;;  %v958_v20 = vrot.slane %v1986_v3, 4  ;;  %v961_v21 = vrot.slane %v1986_v3, 7  ;;  %v959_v25 = vrot.slane %v1986_v3, 5 }
 0x116   : > { %v963_v26 = vrot.slane %v1992_v13, 2  ;;  %v964_v32 = vrot.slane %v1992_v13, 3  ;;  %v962_v37 = vrot.slane %v1992_v13, 1 }
 0x1cd   : > { %v1534_v61 = vpop.f32.mrb[0].mxu1 }
 0x1ce   : > { %v683_v62 = vadd.f32 %v1534_v61, %v1980_v59  ;;  %v674_v63 = vpop.f32.mrb[1].mxu1 }
 0x1cf   : > { %v675_v1 = vadd.f32 %v1980_v59, %v674_v63  ;;  %v1535_v2 = vpop.f32.mrb[2].mxu1 }
 0x1d0   : > { %v739_v4 = vmax.f32 %v683_v62, 0.0  ;;  %v686_v5 = vadd.f32 %v1535_v2, %v1980_v59  ;;  %v677_v6 = vpop.f32.mrb[3].mxu1 }
 0x1d1   : > { %v737_v7 = vmax.f32 %v675_v1, 0.0  ;;  %v678_v8 = vadd.f32 %v1980_v59, %v677_v6 }
 0x1d2   : > { %v835_v9 = vmul.f32 %v766_v45, %v739_v4  ;;  %v740_v10 = vmax.f32 %v686_v5, 0.0 }
 0x1d3   : > { %v833_v14 = vmul.f32 %v756_v49, %v737_v7  ;;  %v738_v15 = vmax.f32 %v678_v8, 0.0 }
 0x1d4   : > { %v861_v18 = vrot.slane %v835_v9, 4  ;;  %v836_v19 = vmul.f32 %v771_v50, %v740_v10 }
 0x1d5   : > { %v849_v22 = vrot.slane %v833_v14, 4  ;;  %v834_v23 = vmul.f32 %v761_v44, %v738_v15  ;;  %v1538_v24 = vpop.f32.mrb[4].mxu1 }
 0x1d6   : > { %v862_v27 = vadd.f32 %v861_v18, %v835_v9  ;;  %v867_v28 = vrot.slane %v836_v19, 4  ;;  %v699_v29 = vadd.f32 %v1538_v24, %v1980_v59  ;;  %v690_v30 = vpop.f32.mrb[5].mxu1 }
 0x1d7   : > { %v850_v33 = vadd.f32 %v849_v22, %v833_v14  ;;  %v855_v34 = vrot.slane %v834_v23, 4  ;;  %v691_v35 = vadd.f32 %v1980_v59, %v690_v30  ;;  %v1539_v36 = vpop.f32.mrb[6].mxu1 }
 0x1d8   : > { %v863_v38 = vrot.slane %v862_v27, 2  ;;  %v868_v39 = vadd.f32 %v867_v28, %v836_v19  ;;  %v743_v40 = vmax.f32 %v699_v29, 0.0  ;;  %v702_v41 = vadd.f32 %v1539_v36, %v1980_v59  ;;  %v693_v42 = vpop.f32.mrb[7].mxu1 }
 0x1d9   : > { %v851_v43 = vrot.slane %v850_v33, 2  ;;  %v856_v44 = vadd.f32 %v855_v34, %v834_v23  ;;  %v741_v45 = vmax.f32 %v691_v35, 0.0  ;;  %v694_v46 = vadd.f32 %v1980_v59, %v693_v42 }
 0x1da   : > { %v864_v49 = vadd.f32 %v863_v38, %v862_v27  ;;  %v869_v50 = vrot.slane %v868_v39, 2  ;;  %v839_v61 = vmul.f32 %v786_v57, %v743_v40  ;;  %v744_v62 = vmax.f32 %v702_v41, 0.0 }
 0x1db   : > { %v852_v63 = vadd.f32 %v851_v43, %v850_v33  ;;  %v857_v1 = vrot.slane %v856_v44, 2  ;;  %v837_v2 = vmul.f32 %v1967_v53, %v741_v45  ;;  %v742_v4 = vmax.f32 %v694_v46, 0.0 }
 0x1dc   : > { %v865_v5 = vrot.slane %v864_v49, 1  ;;  %v870_v6 = vadd.f32 %v869_v50, %v868_v39  ;;  %v885_v7 = vrot.slane %v839_v61, 4  ;;  %v840_v8 = vmul.f32 %v791_v60, %v744_v62 }
 0x1dd   : > { %v853_v9 = vrot.slane %v852_v63, 1  ;;  %v858_v10 = vadd.f32 %v857_v1, %v856_v44  ;;  %v873_v14 = vrot.slane %v837_v2, 4  ;;  %v838_v15 = vmul.f32 %v1971_v55, %v742_v4  ;;  %v1542_v18 = vpop.f32.mrb[8].mxu1 }
 0x1de   : > { %v866_v19 = vadd.f32 %v865_v5, %v864_v49  ;;  %v871_v22 = vrot.slane %v870_v6, 1  ;;  %v886_v23 = vadd.f32 %v885_v7, %v839_v61  ;;  %v891_v57 = vrot.slane %v840_v8, 4  ;;  %v706_v24 = vpop.f32.mrb[9].mxu1 }
 0x1df   : > { %v854_v27 = vadd.f32 %v853_v9, %v852_v63  ;;  %v859_v28 = vrot.slane %v858_v10, 1  ;;  %v874_v29 = vadd.f32 %v873_v14, %v837_v2  ;;  %v879_v53 = vrot.slane %v838_v15, 4  ;;  %v1543_v30 = vpop.f32.mrb[10].mxu1 }
 0x1e0   : > { %v872_v33 = vadd.f32 %v871_v22, %v870_v6  ;;  %v887_v34 = vrot.slane %v886_v23, 2  ;;  %v892_v35 = vadd.f32 %v891_v57, %v840_v8  ;;  %v987_v60 = vmul.f32 %v956_v11, %v866_v19  ;;  %v709_v36 = vpop.f32.mrb[11].mxu1 }
 0x1e1   : > { %v860_v55 = vadd.f32 %v859_v28, %v858_v10  ;;  %v875_v38 = vrot.slane %v874_v29, 2  ;;  %v880_v39 = vadd.f32 %v879_v53, %v838_v15  ;;  %v985_v40 = vmul.f32 %v1986_v3, %v854_v27 }
 0x1e2   : > { %v888_v41 = vadd.f32 %v887_v34, %v886_v23  ;;  %v893_v42 = vrot.slane %v892_v35, 2  ;;  %v988_v43 = vmul.f32 %v957_v12, %v872_v33  ;;  %v1003_v44 = vpack.c.bf16 %v987_v60, %v987_v60 }
 0x1e3   : > { %v876_v45 = vadd.f32 %v875_v38, %v874_v29  ;;  %v881_v46 = vrot.slane %v880_v39, 2  ;;  %v986_v49 = vmul.f32 %v955_v16, %v860_v55  ;;  %v1001_v50 = vpack.c.bf16 %v985_v40, %v985_v40 }
 0x1e4   : > { %v889_v11 = vrot.slane %v888_v41, 1  ;;  %v894_v61 = vadd.f32 %v893_v42, %v892_v35  ;;  %v1004_v62 = vpack.c.bf16 %v988_v43, %v988_v43  ;;  %v965_v63 = vrot.slane %v1992_v13, 4 }
 0x1e5   : > { %v877_v1 = vrot.slane %v876_v45, 1  ;;  %v882_v2 = vadd.f32 %v881_v46, %v880_v39  ;;  %v1002_v4 = vpack.c.bf16 %v986_v49, %v986_v49  ;;  %v1546_v5 = vpop.f32.mrb[12].mxu1  ;;  %v966_v6 = vrot.slane %v1992_v13, 5 }
 0x1e6   : > { %v890_v7 = vadd.f32 %v889_v11, %v888_v41  ;;  %v895_v12 = vrot.slane %v894_v61, 1  ;;  %v1056_v8 = vunpack.c.l.b16 %v1001_v50  ;;  %v1058_v9 = vunpack.c.l.b16 %v1003_v44  ;;  %v722_v10 = vpop.f32.mrb[13].mxu1 }
 0x1e7   : > { %v878_v14 = vadd.f32 %v877_v1, %v876_v45  ;;  %v883_v15 = vrot.slane %v882_v2, 1  ;;  %v1057_v16 = vunpack.c.l.b16 %v1002_v4  ;;  %v715_v19 = vadd.f32 %v1542_v18, %v1980_v59  ;;  %v1547_v22 = vpop.f32.mrb[14].mxu1 }
 0x1e8   : > { %v896_v23 = vadd.f32 %v895_v12, %v894_v61  ;;  %v991_v57 = vmul.f32 %v960_v17, %v890_v7  ;;  %v2020_v27 = vunpack.c.l.b16 %v1004_v62  ;;  %v707_v28 = vadd.f32 %v1980_v59, %v706_v24  ;;  %v725_v29 = vpop.f32.mrb[15].mxu1 }
 0x1e9   : > { %v884_v53 = vadd.f32 %v883_v15, %v882_v2  ;;  %v989_v33 = vmul.f32 %v958_v20, %v878_v14  ;;  %v1072_v34 = vrot.slane %v1057_v16, 7  ;;  %v747_v35 = vmax.f32 %v715_v19, 0.0 }
 0x1ea   : > { %v2027_v60 = vmul.f32 %v961_v21, %v896_v23  ;;  %v1075_v18 = vrot.slane %v1058_v9, 6  ;;  %v745_v55 = vmax.f32 %v707_v28, 0.0  ;;  %v718_v38 = vadd.f32 %v1543_v30, %v1980_v59 }
 0x1eb   : > { %v2032_v17 = vmul.f32 %v959_v25, %v884_v53  ;;  %v1007_v24 = vpack.c.bf16 %v991_v57, %v991_v57  ;;  %v1074_v39 = vsel %vm1073_vm2, %v1072_v34, %v1056_v8  ;;  %v843_v40 = vmul.f32 %v1961_v48, %v747_v35 }
 0x1ec   : > { %v2037_v20 = vsel %vm1076_vm3, %v1075_v18, %v1074_v39  ;;  %v841_v41 = vmul.f32 %v1963_v51, %v745_v55  ;;  %v967_v21 = vrot.slane %v1992_v13, 6  ;;  %v968_v42 = vrot.slane %v1992_v13, 7 }
 0x1ed   : > { %v1005_v43 = vpack.c.bf16 %v989_v33, %v989_v33  ;;  %v1078_v30 = vrot.slane %v2020_v27, 5  ;;  %v909_v3 = vrot.slane %v843_v40, 4  ;;  %v748_v25 = vmax.f32 %v718_v38, 0.0 }
 0x1ee   : > { %v1008_v44 = vpack.c.bf16 %v2027_v60, %v2027_v60  ;;  %v897_v45 = vrot.slane %v841_v41, 4  ;;  %v710_v48 = vadd.f32 %v1980_v59, %v709_v36  ;;  %v731_v46 = vadd.f32 %v1546_v5, %v1980_v59 }
 0x1ef   : > { %v1006_v51 = vpack.c.bf16 %v2032_v17, %v2032_v17  ;;  %v2049_v49 = vunpack.c.l.b16 %v1007_v24  ;;  %v910_v50 = vadd.f32 %v909_v3, %v843_v40  ;;  %v844_v11 = vmul.f32 %v1965_v52, %v748_v25 }
 0x1f0   : > { %v898_v61 = vadd.f32 %v897_v45, %v841_v41  ;;  %v746_v62 = vmax.f32 %v710_v48, 0.0  ;;  %v751_v1 = vmax.f32 %v731_v46, 0.0  ;;  %v723_v2 = vadd.f32 %v1980_v59, %v722_v10 }
 0x1f1   : > { %v2053_v4 = vunpack.c.l.b16 %v1005_v43  ;;  %v911_v7 = vrot.slane %v910_v50, 2  ;;  %v915_v12 = vrot.slane %v844_v11, 4  ;;  %v734_v36 = vadd.f32 %v1547_v22, %v1980_v59 }
 0x1f2   : > { %v899_v5 = vrot.slane %v898_v61, 2  ;;  %v842_v8 = vmul.f32 %v1958_v47, %v746_v62  ;;  %v847_v9 = vmul.f32 %v1975_v58, %v751_v1  ;;  %v749_v14 = vmax.f32 %v723_v2, 0.0 }
 0x1f3   : > { %v912_v15 = vadd.f32 %v911_v7, %v910_v50  ;;  %v916_v16 = vadd.f32 %v915_v12, %v844_v11  ;;  %v752_v52 = vmax.f32 %v734_v36, 0.0  ;;  %v726_v19 = vadd.f32 %v1980_v59, %v725_v29 }
 0x1f4   : > { %v900_v23 = vadd.f32 %v899_v5, %v898_v61  ;;  %v903_v57 = vrot.slane %v842_v8, 4  ;;  %v933_v10 = vrot.slane %v847_v9, 4  ;;  %v845_v28 = vmul.f32 %v1969_v54, %v749_v14 }
 0x1f5   : > { %v913_v53 = vrot.slane %v912_v15, 1  ;;  %v917_v33 = vrot.slane %v916_v16, 2  ;;  %v848_v22 = vmul.f32 %v1983_v0, %v752_v52  ;;  %v750_v34 = vmax.f32 %v726_v19, 0.0 }
 0x1f6   : > { %v901_v35 = vrot.slane %v900_v23, 1  ;;  %v904_v47 = vadd.f32 %v903_v57, %v842_v8  ;;  %v934_v18 = vadd.f32 %v933_v10, %v847_v9  ;;  %v921_v58 = vrot.slane %v845_v28, 4 }
 0x1f7   : > { %v914_v55 = vadd.f32 %v913_v53, %v912_v15  ;;  %v918_v38 = vadd.f32 %v917_v33, %v916_v16  ;;  %v939_v17 = vrot.slane %v848_v22, 4  ;;  %v846_v59 = vmul.f32 %v1973_v56, %v750_v34 }
 0x1f8   : > { %v902_v29 = vadd.f32 %v901_v35, %v900_v23  ;;  %v905_v24 = vrot.slane %v904_v47, 2  ;;  %v935_v39 = vrot.slane %v934_v18, 2  ;;  %v922_v54 = vadd.f32 %v921_v58, %v845_v28 }
 0x1f9   : > { %v1087_v40 = vrot.slane %v2049_v49, 2  ;;  %v919_v0 = vrot.slane %v918_v38, 1  ;;  %v940_v41 = vadd.f32 %v939_v17, %v848_v22  ;;  %v927_v43 = vrot.slane %v846_v59, 4 }
 0x1fa   : > { %v906_v3 = vadd.f32 %v905_v24, %v904_v47  ;;  %v936_v25 = vadd.f32 %v935_v39, %v934_v18  ;;  %v923_v45 = vrot.slane %v922_v54, 2  ;;  %v995_v48 = vmul.f32 %v963_v26, %v914_v55 }
 0x1fb   : > { %v1061_v46 = vunpack.c.l.b16 %v1006_v51  ;;  %v920_v56 = vadd.f32 %v919_v0, %v918_v38  ;;  %v941_v50 = vrot.slane %v940_v41, 2  ;;  %v928_v11 = vadd.f32 %v927_v43, %v846_v59 }
 0x1fc   : > { %v907_v61 = vrot.slane %v906_v3, 1  ;;  %v937_v62 = vrot.slane %v936_v25, 1  ;;  %v924_v1 = vadd.f32 %v923_v45, %v922_v54  ;;  %v993_v2 = vmul.f32 %v1992_v13, %v902_v29 }
 0x1fd   : > { %v1081_v49 = vrot.slane %v2053_v4, 4  ;;  %v942_v7 = vadd.f32 %v941_v50, %v940_v41  ;;  %v929_v12 = vrot.slane %v928_v11, 2  ;;  %v996_v36 = vmul.f32 %v964_v32, %v920_v56  ;;  %v1660_v50 = vld [vmem:[%s2168_s8 + $0x30] sm:$0xff]  }
 0x1fe   : > { %v908_v5 = vadd.f32 %v907_v61, %v906_v3  ;;  %v938_v8 = vadd.f32 %v937_v62, %v936_v25  ;;  %v925_v26 = vrot.slane %v924_v1, 1  ;;  %v1011_v51 = vpack.c.bf16 %v995_v48, %v995_v48  ;;  %1581 = vmatpush3.bf16.msra.mxu1 %v1660_v50  ;;  %v1431_v61 = vld [vmem:[%s2167_s7] ss:$0 sm:$0xff] }
 0x1ff   : > { %v1084_v9 = vrot.slane %v1061_v46, 3  ;;  %v943_v14 = vrot.slane %v942_v7, 1  ;;  %v930_v15 = vadd.f32 %v929_v12, %v928_v11  ;;  %v1012_v16 = vpack.c.bf16 %v996_v36, %v996_v36  ;;  %1582 = vmatprep.subr.bf16.mxu1 %v1728_v31  ;;  %v1661_v11 = vld [vmem:[%s2168_s8 + $0x38] sm:$0xff]   ;;  %v1440_v31 = vld [vmem:[%s2169_s9] ss:$0 sm:$0xff] }
 0x200   : > { %v926_v52 = vadd.f32 %v925_v26, %v924_v1  ;;  %v994_v19 = vmul.f32 %v962_v37, %v908_v5  ;;  %v999_v4 = vmul.f32 %v967_v21, %v938_v8  ;;  %v1009_v23 = vpack.c.bf16 %v993_v2, %v993_v2 }
 0x201   : > { %v944_v57 = vadd.f32 %v943_v14, %v942_v7  ;;  %v931_v10 = vrot.slane %v930_v15, 1  ;;  %v1063_v32 = vunpack.c.l.b16 %v1008_v44  ;;  %v1080_v28 = vsel %vm1079_vm4, %v1078_v30, %v2037_v20 }
 0x202   : > { %v997_v53 = vmul.f32 %v965_v63, %v926_v52  ;;  %v1010_v33 = vpack.c.bf16 %v994_v19, %v994_v19  ;;  %v1066_v37 = vunpack.c.l.b16 %v1011_v51  ;;  %v1083_v22 = vsel %vm1082_vm5, %v1081_v49, %v1080_v28  ;;  %1583 = vmatpush3.bf16.msra.mxu1 %v1661_v11 }
 0x203   : > { %v932_v21 = vadd.f32 %v931_v10, %v930_v15  ;;  %v1000_v34 = vmul.f32 %v968_v42, %v944_v57  ;;  %v1067_v35 = vunpack.c.l.b16 %v1012_v16  ;;  %v1086_v60 = vsel %vm1085_vm6, %v1084_v9, %v1083_v22 }
 0x204   : > { %v1013_v44 = vpack.c.bf16 %v997_v53, %v997_v53  ;;  %v1015_v47 = vpack.c.bf16 %v999_v4, %v999_v4  ;;  %v1065_v18 = vunpack.c.l.b16 %v1010_v33  ;;  %v1089_v27 = vsel %vm1088_vm7, %v1087_v40, %v1086_v60 }
 0x205   : > { %v998_v20 = vmul.f32 %v966_v6, %v932_v21  ;;  %v1016_v63 = vpack.c.bf16 %v1000_v34, %v1000_v34  ;;  %v1090_v30 = vrot.slane %v1063_v32, 1  ;;  %v1064_v58 = vunpack.c.l.b16 %v1009_v23 }
 0x206   : > { %v1068_v55 = vunpack.c.l.b16 %v1013_v44  ;;  %v1093_v38 = vrot.slane %v1065_v18, 7  ;;  %v1095_v59 = vrot.slane %v1066_v37, 6  ;;  %v1070_v29 = vunpack.c.l.b16 %v1015_v47 }
 0x207   : > { %v1014_v17 = vpack.c.bf16 %v998_v20, %v998_v20  ;;  %v1092_v42 = vsel %vm1091_vm8, %v1090_v30, %v1089_v27  ;;  %v1097_v39 = vrot.slane %v1067_v35, 5  ;;  %v1071_v41 = vunpack.c.l.b16 %v1016_v63 }
 0x208   : > { %v1094_v24 = vsel %vm1073_vm2, %v1093_v38, %v1064_v58  ;;  %v1099_v54 = vrot.slane %v1068_v55, 4  ;;  %v1103_v3 = vrot.slane %v1070_v29, 2 }
 0x209   : > { %v1069_v0 = vunpack.c.l.b16 %v1014_v17  ;;  %v1096_v40 = vsel %vm1076_vm3, %v1095_v59, %v1094_v24  ;;  %v1105_v45 = vrot.slane %v1071_v41, 1 }
 0x20a   : > { %v1098_v13 = vsel %vm1079_vm4, %v1097_v39, %v1096_v40 }
 0x20b   : > { %v1101_v6 = vrot.slane %v1069_v0, 3  ;;  %v1100_v43 = vsel %vm1082_vm5, %v1099_v54, %v1098_v13 }
 0x20d   : > { %v1102_v25 = vsel %vm1085_vm6, %v1101_v6, %v1100_v43 }
 0x20e   : > { %v1104_v48 = vsel %vm1088_vm7, %v1103_v3, %v1102_v25 }
 0x20f   : > { %v1106_v46 = vsel %vm1091_vm8, %v1105_v45, %v1104_v48 }
 0x210   : > { %v1107_v56 = vpack.c.b16 %v1106_v46, %v1092_v42 }
 0x212   : > { %1565 = vmatmul.mubr.bf16.vlgmr.msra.gmra.mrb[16].mxu0 %v1107_v56 }
 0x2e5   : > { %v1191_v62 = vpop.f32.mrb[16].mxu0 }
 0x2e6   : > { %v1192_v1 = vadd.f32 %v1431_v61, %v1191_v62  ;;  %v1566_v2 = vpop.f32.mrb[17].mxu0 }
 0x2e7   : > { %v1194_v49 = vpop.f32.mrb[18].mxu0 }
 0x2e8   : > { %v1195_v7 = vadd.f32 %v1431_v61, %v1194_v49  ;;  %v1567_v12 = vpop.f32.mrb[19].mxu0  ;;  %v1198_v36 = vmax.f32 %v1192_v1, 0.0 }
 0x2ea   : > { %v1199_v5 = vmax.f32 %v1195_v7, 0.0 }
 0x2ec   : > { %v1200_v8 = vpack.c.bf16 %v1199_v5, %v1198_v36 }
 0x2ee   : > { %1585 = vmatmul.mubr.bf16.vlgmr.msra.gmra.mrb[16].mxu1 %v1200_v8 }
 0x3c1   : > { %v1306_v26 = vpop.f32.mrb[16].mxu1 }
 0x3c2   : > { %v1307_v51 = vadd.f32 %v1440_v31, %v1306_v26  ;;  %v1586_v9 = vpop.f32.mrb[17].mxu1 }
 0x3c3   : > { %v1309_v14 = vpop.f32.mrb[18].mxu1 }
 0x3c4   : > { %1313 = vst [vmem:[%s369_s29] sm:$0xff] %v1307_v51  ;;  %v1310_v15 = vadd.f32 %v1440_v31, %v1309_v14  ;;  %v1587_v16 = vpop.f32.mrb[19].mxu1 }
 0x3c6   : > { %1314 = vst [vmem:[%s369_s29 + $0x8] sm:$0xff] %v1310_v15 }
 0x3c7   : > { %1675 = shalt.err (!%p1672_p4)
}
 0x3c8   : > { %s1676_s26 = scalar_lea.hbm %s2117_s20, 256  ;;  %s1680_s12 = scalar_lea.hbm %s2170_s10, 512 }
 0x3c9   : > { %p1677_p7 = scmp.ne.s32.totalorder %s2117_s20, %s1676_s26  ;;  %p1681_p10 = scmp.lt.u32.totalorder %s2117_s20, %s2170_s10 }
 0x3ca   : > { %p1682_p11 = scmp.lt.u32.totalorder %s1680_s12, %s1676_s26  ;;  %p1684_p13 = scmp.lt.u32.totalorder %s1676_s26, %s2117_s20 }
 0x3cb   : > { %p1678_p8 = pnand %p1677_p7, %p1826_p5 }
 0x3cc   : > { %p1683_p12 = por %p1682_p11, %p1681_p10 }
 0x3cd   : > { %p1679_p9 = pneg %p1678_p8 }
 0x3ce   : > { %p1685_p0 = por %p1684_p13, %p1683_p12 }
 0x3d0   : > { %p1686_p1 = pnand %p1685_p0, %p1679_p9 }
 0x3d2   : > { %1689 = shalt.err (!%p1686_p1)
}
 0x3d3   : > { %s1731_s17 = smov 128   ;;  %s1732_s27 = smov 8  }
 0x3d4   : > { %1588 = dma.vmem_to_hbm [thread:$0]  (%p1826_p5), %s2112_s30, 256, %s2117_s20, %s2119_s25, %s1731_s17, %s1731_s17, %s1732_s27  }
 0x3d5 PF: > { %p1594_p2 = scmp.ge.s32.totalorder %s1724_s16, 2  ;;  %s1344_s28 = sand.u32 1, %s1712_s13  }
 0x3d6   : > { %s1345_s26 = scalar_lea.sflag [#allocation3], %s1344_s28 }
 0x3d7   : > { %p1591_p3 = pnand %p1594_p2, %p1830_p6 }
 0x3d9   : > { %1707 = dma.done.wait (!%p1591_p3), %s1345_s26, 256  }
 0x3da   : > { %1709 = vsyncadd (!%p1591_p3), %s1345_s26, 4294967040  ;;  %p20_p4 = scmp.ge.s32.totalorder %s1813_s19, 4   ;;  %s2173_s13 = smov %s1716_s14 }
 0x3db   : > { %s2174_s14 = smov %s1720_s15  ;;  %s2175_s15 = smov %s1824_s22 }
 0x3dc   : > { %s2176_s16 = smov %s1813_s19  ;;  %22 = sbr.rel (!%p20_p4) target bundleno = 3 (0x3), region = 98 }
 0x3e3   :  { %1350 = vsyncpa [#allocation3], 1 }
 0x3e4   :  { %1352 = vsyncpa [#allocation3 + $0x1], 1 }

</bundles_post_ra>
